<compile_context>
chip_gen: v7x
topology: tpu7x:2x2x1
jax: 0.10.0
libtpu: 0.0.40
codegen_flags: <defaults>
</compile_context>

<pallas_src>
import functools

import jax
import jax.numpy as jnp
import numpy as np
from jax.experimental import pallas as pl
from jax.experimental.pallas import tpu as pltpu


# ----------------------------- Pallas kernel --------------------------------
def _rot90_kernel(aug_ref, x_ref, o_ref):
    """One grid step: rotate `block_slices` (H, W) slices per aug_ref[0].

    aug_ref : SMEM (1,) int32    0 = -90deg, 1 = identity, 2 = +90deg
    x_ref   : VMEM (TN, H, W)
    o_ref   : VMEM (TN, H, W)
    """
    aug = aug_ref[0]
    tn, h, _ = x_ref.shape

    @pl.when(aug == 1)
    def _():
        o_ref[...] = x_ref[...]

    @pl.when(aug != 1)
    def _():
        # Anti-identity (exchange) matrix: J[i, k] = 1 iff i + k == h - 1.
        rows = jax.lax.broadcasted_iota(jnp.int32, (h, h), 0)
        cols = jax.lax.broadcasted_iota(jnp.int32, (h, h), 1)
        j_mat = (rows + cols == h - 1).astype(x_ref.dtype)

        @pl.when(aug == 0)
        def _():
            # clockwise 90deg: out[i, j] = x[h-1-j, i]  ==  x.T @ J
            for n in range(tn):                     # static unroll over slices
                xt = x_ref[n].T                     # 2-D XLU transpose
                o_ref[n] = jnp.dot(
                    xt, j_mat,
                    preferred_element_type=jnp.float32,
                    precision=jax.lax.Precision.HIGHEST,
                ).astype(o_ref.dtype)

        @pl.when(aug == 2)
        def _():
            # counter-clockwise 90deg: out[i, j] = x[j, h-1-i]  ==  J @ x.T
            for n in range(tn):
                xt = x_ref[n].T
                o_ref[n] = jnp.dot(
                    j_mat, xt,
                    preferred_element_type=jnp.float32,
                    precision=jax.lax.Precision.HIGHEST,
                ).astype(o_ref.dtype)


# ------------------------------- wrappers ------------------------------------
@functools.partial(jax.jit, static_argnames=("block_slices",))
def rotate90_pallas(img, aug_idx, *, block_slices=8):
    """Rotate img [..., H, W] by -90 / 0 / +90 deg (aug_idx 0 / 1 / 2)."""
    *lead, h, w = img.shape
    if h != w:
        raise ValueError("synthetic rot90 augmentation assumes square images")
    n = int(np.prod(lead, dtype=np.int64)) if lead else 1
    flat = img.reshape(n, h, w)

    tn = max(1, min(int(block_slices), n))
    n_pad = ((n + tn - 1) // tn) * tn
    if n_pad != n:
        flat = jnp.pad(flat, ((0, n_pad - n), (0, 0), (0, 0)))

    aug_arr = jnp.asarray(aug_idx, dtype=jnp.int32).reshape((1,))

    out = pl.pallas_call(
        _rot90_kernel,
        out_shape=jax.ShapeDtypeStruct((n_pad, h, w), img.dtype),
        grid_spec=pltpu.PrefetchScalarGridSpec(
            num_scalar_prefetch=1,
            grid=(n_pad // tn,),
            in_specs=[pl.BlockSpec((tn, h, w), lambda g, aug: (g, 0, 0))],
            out_specs=pl.BlockSpec((tn, h, w), lambda g, aug: (g, 0, 0)),
        ),
        compiler_params=pltpu.CompilerParams(
            dimension_semantics=("parallel",),
        ),
    )(aug_arr, flat)

    return out[:n].reshape(img.shape)


def _random_choice3(key, pdf):
    """JAX mirror of `_torch_random_choice` over [0, 1, 2]."""
    pdf = jnp.asarray(pdf, jnp.float32)
    cdf = jnp.cumsum(pdf / jnp.sum(pdf))
    u = jax.random.uniform(key, ())
    idx = 3 - jnp.sum((u < cdf).astype(jnp.int32))
    return jnp.clip(idx, 0, 2).astype(jnp.int32)


def equivariant_transformation_forward(data, key, *, p=1.0, num_classes=10,
                                        pdf=(1.0, 1.0, 1.0)):
    """Forward of EquivariantTransformation on (img, label) -> (img, label)."""
    img, label = data
    k_choice, k_flip, k_new = jax.random.split(key, 3)

    aug_idx = _random_choice3(k_choice, pdf)
    img_out = rotate90_pallas(img, aug_idx)

    # Label is reshuffled only in the equivariant ranges, with probability p.
    change = jnp.logical_and(aug_idx != 1, jax.random.uniform(k_flip, ()) < p)
    new_label = jax.random.randint(k_new, (), 0, num_classes, dtype=jnp.int32)
    label_out = jnp.where(change, new_label, jnp.asarray(label, jnp.int32))
    return img_out, label_out


# ------------------------------- reference -----------------------------------
def rotate90_reference(img, aug_idx):
    cw = jnp.rot90(img, k=-1, axes=(-2, -1))
    ccw = jnp.rot90(img, k=1, axes=(-2, -1))
    return jnp.where(jnp.equal(aug_idx, 1), img,
                     jnp.where(jnp.equal(aug_idx, 0), cw, ccw))


# --------------------------------- demo ---------------------------------------
if __name__ == "__main__":
    key = jax.random.PRNGKey(0)
    k_img, k_fwd = jax.random.split(key)

    B, C, H, W = 2, 4, 16, 16
    # Round values to bf16-representable f32 so the permutation matmul is
    # bit-exact regardless of the f32 matmul pass count.
    img = jax.random.normal(k_img, (B, C, H, W), jnp.float32)
    img = img.astype(jnp.bfloat16).astype(jnp.float32)
    label = jnp.asarray(3, jnp.int32)

    # Exercise all three augmentation branches of the kernel.
    for aug in range(3):
        out = jax.block_until_ready(rotate90_pallas(img, jnp.int32(aug)))
        ref = rotate90_reference(img, aug)
        np.testing.assert_allclose(np.asarray(out), np.asarray(ref),
                                   rtol=1e-6, atol=1e-6)

    # Non-divisible slice count exercises the padding + multi-step grid path.
    img3 = img[0, :3]                                        # (3, 16, 16)
    out3 = jax.block_until_ready(
        rotate90_pallas(img3, jnp.int32(2), block_slices=2))
    np.testing.assert_allclose(np.asarray(out3),
                               np.asarray(rotate90_reference(img3, 2)),
                               rtol=1e-6, atol=1e-6)

    # Full forward (random branch choice + label logic), per module semantics.
    img_out, label_out = equivariant_transformation_forward((img, label), k_fwd)
    img_out = jax.block_until_ready(img_out)
    label_out = jax.block_until_ready(label_out)
    assert img_out.shape == img.shape and img_out.dtype == img.dtype
    assert label_out.shape == () and label_out.dtype == jnp.int32

    # Reference of the full forward with identical RNG draws.
    k_choice, k_flip, k_new = jax.random.split(k_fwd, 3)
    aug_idx_ref = _random_choice3(k_choice, (1.0, 1.0, 1.0))
    img_ref = rotate90_reference(img, aug_idx_ref)
    change_ref = jnp.logical_and(aug_idx_ref != 1,
                                 jax.random.uniform(k_flip, ()) < 1.0)
    new_label_ref = jax.random.randint(k_new, (), 0, 10, dtype=jnp.int32)
    label_ref = jnp.where(change_ref, new_label_ref, label)
    np.testing.assert_allclose(np.asarray(img_out), np.asarray(img_ref),
                               rtol=1e-6, atol=1e-6)
    assert int(label_out) == int(label_ref)

    print("KERNEL_OK")
</pallas_src>

<mosaic_0001>
module attributes {stable_mosaic.version = 11 : i64} {
  func.func @_rot90_kernel(%arg0: i32, %arg1: memref<1xi32, #tpu.memory_space<smem>>, %arg2: memref<8x16x16xf32, #tpu.memory_space<vmem>>, %arg3: memref<8x16x16xf32, #tpu.memory_space<vmem>>) attributes {dimension_semantics = [#tpu.dimension_semantics<parallel>], iteration_bounds = array<i64: 1>, scalar_prefetch = 1 : i64, scratch_operands = 0 : i64, tpu.core_type = #tpu.core_type<tc>, window_params = [{transform_indices = @transform_0, window_bounds = array<i64: 8, 16, 16>}, {transform_indices = @transform_1, window_bounds = array<i64: 8, 16, 16>}]} {
    %c0 = arith.constant 0 : index
    %0 = memref.load %arg1[%c0] : memref<1xi32, #tpu.memory_space<smem>>
    %c1_i32 = arith.constant 1 : i32
    %1 = arith.cmpi eq, %0, %c1_i32 : i32
    %2 = arith.extui %1 : i1 to i32
    %c0_i32 = arith.constant 0 : i32
    %3 = arith.cmpi ne, %2, %c0_i32 : i32
    scf.if %3 {
      %c0_2 = arith.constant 0 : index
      %c0_3 = arith.constant 0 : index
      %c0_4 = arith.constant 0 : index
      %7 = vector.load %arg2[%c0_2, %c0_3, %c0_4] : memref<8x16x16xf32, #tpu.memory_space<vmem>>, vector<8x16x16xf32>
      %c0_5 = arith.constant 0 : index
      %c0_6 = arith.constant 0 : index
      %c0_7 = arith.constant 0 : index
      %8 = vector.load %arg3[%c0_5, %c0_6, %c0_7] : memref<8x16x16xf32, #tpu.memory_space<vmem>>, vector<8x16x16xf32>
      tpu.vector_store %arg3[%c0_5, %c0_6, %c0_7], %7 {strides = array<i32>} : memref<8x16x16xf32, #tpu.memory_space<vmem>>, vector<8x16x16xf32>,
    } else {
    }
    %c1_i32_0 = arith.constant 1 : i32
    %4 = arith.cmpi ne, %0, %c1_i32_0 : i32
    %5 = arith.extui %4 : i1 to i32
    %c0_i32_1 = arith.constant 0 : i32
    %6 = arith.cmpi ne, %5, %c0_i32_1 : i32
    scf.if %6 {
      %7 = tpu.iota {dimensions = array<i32: 0>} : vector<16x16xi32>
      %8 = tpu.iota {dimensions = array<i32: 1>} : vector<16x16xi32>
      %9 = arith.addi %7, %8 : vector<16x16xi32>
      %c15_i32 = arith.constant 15 : i32
      %10 = vector.broadcast %c15_i32 : i32 to vector<16x16xi32>
      %11 = arith.cmpi eq, %9, %10 : vector<16x16xi32>
      %12 = arith.extui %11 : vector<16x16xi1> to vector<16x16xi32>
      %13 = arith.sitofp %12 : vector<16x16xi32> to vector<16x16xf32>
      %c0_i32_2 = arith.constant 0 : i32
      %14 = arith.cmpi eq, %0, %c0_i32_2 : i32
      %15 = arith.extui %14 : i1 to i32
      %c0_i32_3 = arith.constant 0 : i32
      %16 = arith.cmpi ne, %15, %c0_i32_3 : i32
      scf.if %16 {
        %c0_5 = arith.constant 0 : index
        %c0_6 = arith.constant 0 : index
        %c0_7 = arith.constant 0 : index
        %20 = vector.load %arg2[%c0_5, %c0_6, %c0_7] : memref<8x16x16xf32, #tpu.memory_space<vmem>>, vector<1x16x16xf32>
        %21 = vector.shape_cast %20 : vector<1x16x16xf32> to vector<16x16xf32>
        %22 = tpu.transpose %21, [1, 0] : vector<16x16xf32> -> vector<16x16xf32>
        %cst = arith.constant dense<0.000000e+00> : vector<16x16xf32>
        %23 = tpu.matmul %22, %13, %cst {dimension_numbers = #tpu.dot_dimension_numbers<[1], [0], [0], [1], [0, 0, 1, 1], [], []>, precision = #tpu.contract_precision<fp32>} : vector<16x16xf32>, vector<16x16xf32>, vector<16x16xf32> -> vector<16x16xf32>
        %c0_8 = arith.constant 0 : index
        %c0_9 = arith.constant 0 : index
        %c0_10 = arith.constant 0 : index
        %24 = vector.load %arg3[%c0_8, %c0_9, %c0_10] : memref<8x16x16xf32, #tpu.memory_space<vmem>>, vector<1x16x16xf32>
        %25 = vector.shape_cast %24 : vector<1x16x16xf32> to vector<16x16xf32>
        %26 = vector.shape_cast %23 : vector<16x16xf32> to vector<1x16x16xf32>
        tpu.vector_store %arg3[%c0_8, %c0_9, %c0_10], %26 {strides = array<i32>} : memref<8x16x16xf32, #tpu.memory_space<vmem>>, vector<1x16x16xf32>,
        %c1 = arith.constant 1 : index
        %c0_11 = arith.constant 0 : index
        %c0_12 = arith.constant 0 : index
        %27 = vector.load %arg2[%c1, %c0_11, %c0_12] : memref<8x16x16xf32, #tpu.memory_space<vmem>>, vector<1x16x16xf32>
        %28 = vector.shape_cast %27 : vector<1x16x16xf32> to vector<16x16xf32>
        %29 = tpu.transpose %28, [1, 0] : vector<16x16xf32> -> vector<16x16xf32>
        %cst_13 = arith.constant dense<0.000000e+00> : vector<16x16xf32>
        %30 = tpu.matmul %29, %13, %cst_13 {dimension_numbers = #tpu.dot_dimension_numbers<[1], [0], [0], [1], [0, 0, 1, 1], [], []>, precision = #tpu.contract_precision<fp32>} : vector<16x16xf32>, vector<16x16xf32>, vector<16x16xf32> -> vector<16x16xf32>
        %c1_14 = arith.constant 1 : index
        %c0_15 = arith.constant 0 : index
        %c0_16 = arith.constant 0 : index
        %31 = vector.load %arg3[%c1_14, %c0_15, %c0_16] : memref<8x16x16xf32, #tpu.memory_space<vmem>>, vector<1x16x16xf32>
        %32 = vector.shape_cast %31 : vector<1x16x16xf32> to vector<16x16xf32>
        %33 = vector.shape_cast %30 : vector<16x16xf32> to vector<1x16x16xf32>
        tpu.vector_store %arg3[%c1_14, %c0_15, %c0_16], %33 {strides = array<i32>} : memref<8x16x16xf32, #tpu.memory_space<vmem>>, vector<1x16x16xf32>,
        %c2 = arith.constant 2 : index
        %c0_17 = arith.constant 0 : index
        %c0_18 = arith.constant 0 : index
        %34 = vector.load %arg2[%c2, %c0_17, %c0_18] : memref<8x16x16xf32, #tpu.memory_space<vmem>>, vector<1x16x16xf32>
        %35 = vector.shape_cast %34 : vector<1x16x16xf32> to vector<16x16xf32>
        %36 = tpu.transpose %35, [1, 0] : vector<16x16xf32> -> vector<16x16xf32>
        %cst_19 = arith.constant dense<0.000000e+00> : vector<16x16xf32>
        %37 = tpu.matmul %36, %13, %cst_19 {dimension_numbers = #tpu.dot_dimension_numbers<[1], [0], [0], [1], [0, 0, 1, 1], [], []>, precision = #tpu.contract_precision<fp32>} : vector<16x16xf32>, vector<16x16xf32>, vector<16x16xf32> -> vector<16x16xf32>
        %c2_20 = arith.constant 2 : index
        %c0_21 = arith.constant 0 : index
        %c0_22 = arith.constant 0 : index
        %38 = vector.load %arg3[%c2_20, %c0_21, %c0_22] : memref<8x16x16xf32, #tpu.memory_space<vmem>>, vector<1x16x16xf32>
        %39 = vector.shape_cast %38 : vector<1x16x16xf32> to vector<16x16xf32>
        %40 = vector.shape_cast %37 : vector<16x16xf32> to vector<1x16x16xf32>
        tpu.vector_store %arg3[%c2_20, %c0_21, %c0_22], %40 {strides = array<i32>} : memref<8x16x16xf32, #tpu.memory_space<vmem>>, vector<1x16x16xf32>,
        %c3 = arith.constant 3 : index
        %c0_23 = arith.constant 0 : index
        %c0_24 = arith.constant 0 : index
        %41 = vector.load %arg2[%c3, %c0_23, %c0_24] : memref<8x16x16xf32, #tpu.memory_space<vmem>>, vector<1x16x16xf32>
        %42 = vector.shape_cast %41 : vector<1x16x16xf32> to vector<16x16xf32>
        %43 = tpu.transpose %42, [1, 0] : vector<16x16xf32> -> vector<16x16xf32>
        %cst_25 = arith.constant dense<0.000000e+00> : vector<16x16xf32>
        %44 = tpu.matmul %43, %13, %cst_25 {dimension_numbers = #tpu.dot_dimension_numbers<[1], [0], [0], [1], [0, 0, 1, 1], [], []>, precision = #tpu.contract_precision<fp32>} : vector<16x16xf32>, vector<16x16xf32>, vector<16x16xf32> -> vector<16x16xf32>
        %c3_26 = arith.constant 3 : index
        %c0_27 = arith.constant 0 : index
        %c0_28 = arith.constant 0 : index
        %45 = vector.load %arg3[%c3_26, %c0_27, %c0_28] : memref<8x16x16xf32, #tpu.memory_space<vmem>>, vector<1x16x16xf32>
        %46 = vector.shape_cast %45 : vector<1x16x16xf32> to vector<16x16xf32>
        %47 = vector.shape_cast %44 : vector<16x16xf32> to vector<1x16x16xf32>
        tpu.vector_store %arg3[%c3_26, %c0_27, %c0_28], %47 {strides = array<i32>} : memref<8x16x16xf32, #tpu.memory_space<vmem>>, vector<1x16x16xf32>,
        %c4 = arith.constant 4 : index
        %c0_29 = arith.constant 0 : index
        %c0_30 = arith.constant 0 : index
        %48 = vector.load %arg2[%c4, %c0_29, %c0_30] : memref<8x16x16xf32, #tpu.memory_space<vmem>>, vector<1x16x16xf32>
        %49 = vector.shape_cast %48 : vector<1x16x16xf32> to vector<16x16xf32>
        %50 = tpu.transpose %49, [1, 0] : vector<16x16xf32> -> vector<16x16xf32>
        %cst_31 = arith.constant dense<0.000000e+00> : vector<16x16xf32>
        %51 = tpu.matmul %50, %13, %cst_31 {dimension_numbers = #tpu.dot_dimension_numbers<[1], [0], [0], [1], [0, 0, 1, 1], [], []>, precision = #tpu.contract_precision<fp32>} : vector<16x16xf32>, vector<16x16xf32>, vector<16x16xf32> -> vector<16x16xf32>
        %c4_32 = arith.constant 4 : index
        %c0_33 = arith.constant 0 : index
        %c0_34 = arith.constant 0 : index
        %52 = vector.load %arg3[%c4_32, %c0_33, %c0_34] : memref<8x16x16xf32, #tpu.memory_space<vmem>>, vector<1x16x16xf32>
        %53 = vector.shape_cast %52 : vector<1x16x16xf32> to vector<16x16xf32>
        %54 = vector.shape_cast %51 : vector<16x16xf32> to vector<1x16x16xf32>
        tpu.vector_store %arg3[%c4_32, %c0_33, %c0_34], %54 {strides = array<i32>} : memref<8x16x16xf32, #tpu.memory_space<vmem>>, vector<1x16x16xf32>,
        %c5 = arith.constant 5 : index
        %c0_35 = arith.constant 0 : index
        %c0_36 = arith.constant 0 : index
        %55 = vector.load %arg2[%c5, %c0_35, %c0_36] : memref<8x16x16xf32, #tpu.memory_space<vmem>>, vector<1x16x16xf32>
        %56 = vector.shape_cast %55 : vector<1x16x16xf32> to vector<16x16xf32>
        %57 = tpu.transpose %56, [1, 0] : vector<16x16xf32> -> vector<16x16xf32>
        %cst_37 = arith.constant dense<0.000000e+00> : vector<16x16xf32>
        %58 = tpu.matmul %57, %13, %cst_37 {dimension_numbers = #tpu.dot_dimension_numbers<[1], [0], [0], [1], [0, 0, 1, 1], [], []>, precision = #tpu.contract_precision<fp32>} : vector<16x16xf32>, vector<16x16xf32>, vector<16x16xf32> -> vector<16x16xf32>
        %c5_38 = arith.constant 5 : index
        %c0_39 = arith.constant 0 : index
        %c0_40 = arith.constant 0 : index
        %59 = vector.load %arg3[%c5_38, %c0_39, %c0_40] : memref<8x16x16xf32, #tpu.memory_space<vmem>>, vector<1x16x16xf32>
        %60 = vector.shape_cast %59 : vector<1x16x16xf32> to vector<16x16xf32>
        %61 = vector.shape_cast %58 : vector<16x16xf32> to vector<1x16x16xf32>
        tpu.vector_store %arg3[%c5_38, %c0_39, %c0_40], %61 {strides = array<i32>} : memref<8x16x16xf32, #tpu.memory_space<vmem>>, vector<1x16x16xf32>,
        %c6 = arith.constant 6 : index
        %c0_41 = arith.constant 0 : index
        %c0_42 = arith.constant 0 : index
        %62 = vector.load %arg2[%c6, %c0_41, %c0_42] : memref<8x16x16xf32, #tpu.memory_space<vmem>>, vector<1x16x16xf32>
        %63 = vector.shape_cast %62 : vector<1x16x16xf32> to vector<16x16xf32>
        %64 = tpu.transpose %63, [1, 0] : vector<16x16xf32> -> vector<16x16xf32>
        %cst_43 = arith.constant dense<0.000000e+00> : vector<16x16xf32>
        %65 = tpu.matmul %64, %13, %cst_43 {dimension_numbers = #tpu.dot_dimension_numbers<[1], [0], [0], [1], [0, 0, 1, 1], [], []>, precision = #tpu.contract_precision<fp32>} : vector<16x16xf32>, vector<16x16xf32>, vector<16x16xf32> -> vector<16x16xf32>
        %c6_44 = arith.constant 6 : index
        %c0_45 = arith.constant 0 : index
        %c0_46 = arith.constant 0 : index
        %66 = vector.load %arg3[%c6_44, %c0_45, %c0_46] : memref<8x16x16xf32, #tpu.memory_space<vmem>>, vector<1x16x16xf32>
        %67 = vector.shape_cast %66 : vector<1x16x16xf32> to vector<16x16xf32>
        %68 = vector.shape_cast %65 : vector<16x16xf32> to vector<1x16x16xf32>
        tpu.vector_store %arg3[%c6_44, %c0_45, %c0_46], %68 {strides = array<i32>} : memref<8x16x16xf32, #tpu.memory_space<vmem>>, vector<1x16x16xf32>,
        %c7 = arith.constant 7 : index
        %c0_47 = arith.constant 0 : index
        %c0_48 = arith.constant 0 : index
        %69 = vector.load %arg2[%c7, %c0_47, %c0_48] : memref<8x16x16xf32, #tpu.memory_space<vmem>>, vector<1x16x16xf32>
        %70 = vector.shape_cast %69 : vector<1x16x16xf32> to vector<16x16xf32>
        %71 = tpu.transpose %70, [1, 0] : vector<16x16xf32> -> vector<16x16xf32>
        %cst_49 = arith.constant dense<0.000000e+00> : vector<16x16xf32>
        %72 = tpu.matmul %71, %13, %cst_49 {dimension_numbers = #tpu.dot_dimension_numbers<[1], [0], [0], [1], [0, 0, 1, 1], [], []>, precision = #tpu.contract_precision<fp32>} : vector<16x16xf32>, vector<16x16xf32>, vector<16x16xf32> -> vector<16x16xf32>
        %c7_50 = arith.constant 7 : index
        %c0_51 = arith.constant 0 : index
        %c0_52 = arith.constant 0 : index
        %73 = vector.load %arg3[%c7_50, %c0_51, %c0_52] : memref<8x16x16xf32, #tpu.memory_space<vmem>>, vector<1x16x16xf32>
        %74 = vector.shape_cast %73 : vector<1x16x16xf32> to vector<16x16xf32>
        %75 = vector.shape_cast %72 : vector<16x16xf32> to vector<1x16x16xf32>
        tpu.vector_store %arg3[%c7_50, %c0_51, %c0_52], %75 {strides = array<i32>} : memref<8x16x16xf32, #tpu.memory_space<vmem>>, vector<1x16x16xf32>,
      } else {
      }
      %c2_i32 = arith.constant 2 : i32
      %17 = arith.cmpi eq, %0, %c2_i32 : i32
      %18 = arith.extui %17 : i1 to i32
      %c0_i32_4 = arith.constant 0 : i32
      %19 = arith.cmpi ne, %18, %c0_i32_4 : i32
      scf.if %19 {
        %c0_5 = arith.constant 0 : index
        %c0_6 = arith.constant 0 : index
        %c0_7 = arith.constant 0 : index
        %20 = vector.load %arg2[%c0_5, %c0_6, %c0_7] : memref<8x16x16xf32, #tpu.memory_space<vmem>>, vector<1x16x16xf32>
        %21 = vector.shape_cast %20 : vector<1x16x16xf32> to vector<16x16xf32>
        %22 = tpu.transpose %21, [1, 0] : vector<16x16xf32> -> vector<16x16xf32>
        %cst = arith.constant dense<0.000000e+00> : vector<16x16xf32>
        %23 = tpu.matmul %13, %22, %cst {dimension_numbers = #tpu.dot_dimension_numbers<[1], [0], [0], [1], [0, 0, 1, 1], [], []>, precision = #tpu.contract_precision<fp32>} : vector<16x16xf32>, vector<16x16xf32>, vector<16x16xf32> -> vector<16x16xf32>
        %c0_8 = arith.constant 0 : index
        %c0_9 = arith.constant 0 : index
        %c0_10 = arith.constant 0 : index
        %24 = vector.load %arg3[%c0_8, %c0_9, %c0_10] : memref<8x16x16xf32, #tpu.memory_space<vmem>>, vector<1x16x16xf32>
        %25 = vector.shape_cast %24 : vector<1x16x16xf32> to vector<16x16xf32>
        %26 = vector.shape_cast %23 : vector<16x16xf32> to vector<1x16x16xf32>
        tpu.vector_store %arg3[%c0_8, %c0_9, %c0_10], %26 {strides = array<i32>} : memref<8x16x16xf32, #tpu.memory_space<vmem>>, vector<1x16x16xf32>,
        %c1 = arith.constant 1 : index
        %c0_11 = arith.constant 0 : index
        %c0_12 = arith.constant 0 : index
        %27 = vector.load %arg2[%c1, %c0_11, %c0_12] : memref<8x16x16xf32, #tpu.memory_space<vmem>>, vector<1x16x16xf32>
        %28 = vector.shape_cast %27 : vector<1x16x16xf32> to vector<16x16xf32>
        %29 = tpu.transpose %28, [1, 0] : vector<16x16xf32> -> vector<16x16xf32>
        %cst_13 = arith.constant dense<0.000000e+00> : vector<16x16xf32>
        %30 = tpu.matmul %13, %29, %cst_13 {dimension_numbers = #tpu.dot_dimension_numbers<[1], [0], [0], [1], [0, 0, 1, 1], [], []>, precision = #tpu.contract_precision<fp32>} : vector<16x16xf32>, vector<16x16xf32>, vector<16x16xf32> -> vector<16x16xf32>
        %c1_14 = arith.constant 1 : index
        %c0_15 = arith.constant 0 : index
        %c0_16 = arith.constant 0 : index
        %31 = vector.load %arg3[%c1_14, %c0_15, %c0_16] : memref<8x16x16xf32, #tpu.memory_space<vmem>>, vector<1x16x16xf32>
        %32 = vector.shape_cast %31 : vector<1x16x16xf32> to vector<16x16xf32>
        %33 = vector.shape_cast %30 : vector<16x16xf32> to vector<1x16x16xf32>
        tpu.vector_store %arg3[%c1_14, %c0_15, %c0_16], %33 {strides = array<i32>} : memref<8x16x16xf32, #tpu.memory_space<vmem>>, vector<1x16x16xf32>,
        %c2 = arith.constant 2 : index
        %c0_17 = arith.constant 0 : index
        %c0_18 = arith.constant 0 : index
        %34 = vector.load %arg2[%c2, %c0_17, %c0_18] : memref<8x16x16xf32, #tpu.memory_space<vmem>>, vector<1x16x16xf32>
        %35 = vector.shape_cast %34 : vector<1x16x16xf32> to vector<16x16xf32>
        %36 = tpu.transpose %35, [1, 0] : vector<16x16xf32> -> vector<16x16xf32>
        %cst_19 = arith.constant dense<0.000000e+00> : vector<16x16xf32>
        %37 = tpu.matmul %13, %36, %cst_19 {dimension_numbers = #tpu.dot_dimension_numbers<[1], [0], [0], [1], [0, 0, 1, 1], [], []>, precision = #tpu.contract_precision<fp32>} : vector<16x16xf32>, vector<16x16xf32>, vector<16x16xf32> -> vector<16x16xf32>
        %c2_20 = arith.constant 2 : index
        %c0_21 = arith.constant 0 : index
        %c0_22 = arith.constant 0 : index
        %38 = vector.load %arg3[%c2_20, %c0_21, %c0_22] : memref<8x16x16xf32, #tpu.memory_space<vmem>>, vector<1x16x16xf32>
        %39 = vector.shape_cast %38 : vector<1x16x16xf32> to vector<16x16xf32>
        %40 = vector.shape_cast %37 : vector<16x16xf32> to vector<1x16x16xf32>
        tpu.vector_store %arg3[%c2_20, %c0_21, %c0_22], %40 {strides = array<i32>} : memref<8x16x16xf32, #tpu.memory_space<vmem>>, vector<1x16x16xf32>,
        %c3 = arith.constant 3 : index
        %c0_23 = arith.constant 0 : index
        %c0_24 = arith.constant 0 : index
        %41 = vector.load %arg2[%c3, %c0_23, %c0_24] : memref<8x16x16xf32, #tpu.memory_space<vmem>>, vector<1x16x16xf32>
        %42 = vector.shape_cast %41 : vector<1x16x16xf32> to vector<16x16xf32>
        %43 = tpu.transpose %42, [1, 0] : vector<16x16xf32> -> vector<16x16xf32>
        %cst_25 = arith.constant dense<0.000000e+00> : vector<16x16xf32>
        %44 = tpu.matmul %13, %43, %cst_25 {dimension_numbers = #tpu.dot_dimension_numbers<[1], [0], [0], [1], [0, 0, 1, 1], [], []>, precision = #tpu.contract_precision<fp32>} : vector<16x16xf32>, vector<16x16xf32>, vector<16x16xf32> -> vector<16x16xf32>
        %c3_26 = arith.constant 3 : index
        %c0_27 = arith.constant 0 : index
        %c0_28 = arith.constant 0 : index
        %45 = vector.load %arg3[%c3_26, %c0_27, %c0_28] : memref<8x16x16xf32, #tpu.memory_space<vmem>>, vector<1x16x16xf32>
        %46 = vector.shape_cast %45 : vector<1x16x16xf32> to vector<16x16xf32>
        %47 = vector.shape_cast %44 : vector<16x16xf32> to vector<1x16x16xf32>
        tpu.vector_store %arg3[%c3_26, %c0_27, %c0_28], %47 {strides = array<i32>} : memref<8x16x16xf32, #tpu.memory_space<vmem>>, vector<1x16x16xf32>,
        %c4 = arith.constant 4 : index
        %c0_29 = arith.constant 0 : index
        %c0_30 = arith.constant 0 : index
        %48 = vector.load %arg2[%c4, %c0_29, %c0_30] : memref<8x16x16xf32, #tpu.memory_space<vmem>>, vector<1x16x16xf32>
        %49 = vector.shape_cast %48 : vector<1x16x16xf32> to vector<16x16xf32>
        %50 = tpu.transpose %49, [1, 0] : vector<16x16xf32> -> vector<16x16xf32>
        %cst_31 = arith.constant dense<0.000000e+00> : vector<16x16xf32>
        %51 = tpu.matmul %13, %50, %cst_31 {dimension_numbers = #tpu.dot_dimension_numbers<[1], [0], [0], [1], [0, 0, 1, 1], [], []>, precision = #tpu.contract_precision<fp32>} : vector<16x16xf32>, vector<16x16xf32>, vector<16x16xf32> -> vector<16x16xf32>
        %c4_32 = arith.constant 4 : index
        %c0_33 = arith.constant 0 : index
        %c0_34 = arith.constant 0 : index
        %52 = vector.load %arg3[%c4_32, %c0_33, %c0_34] : memref<8x16x16xf32, #tpu.memory_space<vmem>>, vector<1x16x16xf32>
        %53 = vector.shape_cast %52 : vector<1x16x16xf32> to vector<16x16xf32>
        %54 = vector.shape_cast %51 : vector<16x16xf32> to vector<1x16x16xf32>
        tpu.vector_store %arg3[%c4_32, %c0_33, %c0_34], %54 {strides = array<i32>} : memref<8x16x16xf32, #tpu.memory_space<vmem>>, vector<1x16x16xf32>,
        %c5 = arith.constant 5 : index
        %c0_35 = arith.constant 0 : index
        %c0_36 = arith.constant 0 : index
        %55 = vector.load %arg2[%c5, %c0_35, %c0_36] : memref<8x16x16xf32, #tpu.memory_space<vmem>>, vector<1x16x16xf32>
        %56 = vector.shape_cast %55 : vector<1x16x16xf32> to vector<16x16xf32>
        %57 = tpu.transpose %56, [1, 0] : vector<16x16xf32> -> vector<16x16xf32>
        %cst_37 = arith.constant dense<0.000000e+00> : vector<16x16xf32>
        %58 = tpu.matmul %13, %57, %cst_37 {dimension_numbers = #tpu.dot_dimension_numbers<[1], [0], [0], [1], [0, 0, 1, 1], [], []>, precision = #tpu.contract_precision<fp32>} : vector<16x16xf32>, vector<16x16xf32>, vector<16x16xf32> -> vector<16x16xf32>
        %c5_38 = arith.constant 5 : index
        %c0_39 = arith.constant 0 : index
        %c0_40 = arith.constant 0 : index
        %59 = vector.load %arg3[%c5_38, %c0_39, %c0_40] : memref<8x16x16xf32, #tpu.memory_space<vmem>>, vector<1x16x16xf32>
        %60 = vector.shape_cast %59 : vector<1x16x16xf32> to vector<16x16xf32>
        %61 = vector.shape_cast %58 : vector<16x16xf32> to vector<1x16x16xf32>
        tpu.vector_store %arg3[%c5_38, %c0_39, %c0_40], %61 {strides = array<i32>} : memref<8x16x16xf32, #tpu.memory_space<vmem>>, vector<1x16x16xf32>,
        %c6 = arith.constant 6 : index
        %c0_41 = arith.constant 0 : index
        %c0_42 = arith.constant 0 : index
        %62 = vector.load %arg2[%c6, %c0_41, %c0_42] : memref<8x16x16xf32, #tpu.memory_space<vmem>>, vector<1x16x16xf32>
        %63 = vector.shape_cast %62 : vector<1x16x16xf32> to vector<16x16xf32>
        %64 = tpu.transpose %63, [1, 0] : vector<16x16xf32> -> vector<16x16xf32>
        %cst_43 = arith.constant dense<0.000000e+00> : vector<16x16xf32>
        %65 = tpu.matmul %13, %64, %cst_43 {dimension_numbers = #tpu.dot_dimension_numbers<[1], [0], [0], [1], [0, 0, 1, 1], [], []>, precision = #tpu.contract_precision<fp32>} : vector<16x16xf32>, vector<16x16xf32>, vector<16x16xf32> -> vector<16x16xf32>
        %c6_44 = arith.constant 6 : index
        %c0_45 = arith.constant 0 : index
        %c0_46 = arith.constant 0 : index
        %66 = vector.load %arg3[%c6_44, %c0_45, %c0_46] : memref<8x16x16xf32, #tpu.memory_space<vmem>>, vector<1x16x16xf32>
        %67 = vector.shape_cast %66 : vector<1x16x16xf32> to vector<16x16xf32>
        %68 = vector.shape_cast %65 : vector<16x16xf32> to vector<1x16x16xf32>
        tpu.vector_store %arg3[%c6_44, %c0_45, %c0_46], %68 {strides = array<i32>} : memref<8x16x16xf32, #tpu.memory_space<vmem>>, vector<1x16x16xf32>,
        %c7 = arith.constant 7 : index
        %c0_47 = arith.constant 0 : index
        %c0_48 = arith.constant 0 : index
        %69 = vector.load %arg2[%c7, %c0_47, %c0_48] : memref<8x16x16xf32, #tpu.memory_space<vmem>>, vector<1x16x16xf32>
        %70 = vector.shape_cast %69 : vector<1x16x16xf32> to vector<16x16xf32>
        %71 = tpu.transpose %70, [1, 0] : vector<16x16xf32> -> vector<16x16xf32>
        %cst_49 = arith.constant dense<0.000000e+00> : vector<16x16xf32>
        %72 = tpu.matmul %13, %71, %cst_49 {dimension_numbers = #tpu.dot_dimension_numbers<[1], [0], [0], [1], [0, 0, 1, 1], [], []>, precision = #tpu.contract_precision<fp32>} : vector<16x16xf32>, vector<16x16xf32>, vector<16x16xf32> -> vector<16x16xf32>
        %c7_50 = arith.constant 7 : index
        %c0_51 = arith.constant 0 : index
        %c0_52 = arith.constant 0 : index
        %73 = vector.load %arg3[%c7_50, %c0_51, %c0_52] : memref<8x16x16xf32, #tpu.memory_space<vmem>>, vector<1x16x16xf32>
        %74 = vector.shape_cast %73 : vector<1x16x16xf32> to vector<16x16xf32>
        %75 = vector.shape_cast %72 : vector<16x16xf32> to vector<1x16x16xf32>
        tpu.vector_store %arg3[%c7_50, %c0_51, %c0_52], %75 {strides = array<i32>} : memref<8x16x16xf32, #tpu.memory_space<vmem>>, vector<1x16x16xf32>,
      } else {
      }
    } else {
    }
    return
  }
  func.func @transform_0(%arg0: i32, %arg1: memref<1xi32, #tpu.memory_space<smem>>) -> (i32, i32, i32) {
    %c0_i32 = arith.constant 0 : i32
    %c0_i32_0 = arith.constant 0 : i32
    %c0_i32_1 = arith.constant 0 : i32
    return %arg0, %c0_i32, %c0_i32_0 : i32, i32, i32
  }
  func.func @transform_1(%arg0: i32, %arg1: memref<1xi32, #tpu.memory_space<smem>>) -> (i32, i32, i32) {
    %c0_i32 = arith.constant 0 : i32
    %c0_i32_0 = arith.constant 0 : i32
    %c0_i32_1 = arith.constant 0 : i32
    return %arg0, %c0_i32, %c0_i32_0 : i32, i32, i32
  }
}

</mosaic_0001>

<bundles_post_ra>
// kernel: rotate90_pallas.1
= control target key start
LH: loop header
LB: loop body
LE: loop exit
PB: predicated region body
PF: predicated region fallthrough
CT: control target
= control target key end

     0   :  { %8 = vsyncpa [#allocation5], 0  ;;  %s11084_s0 = inlined_call_operand.<no memory space> [shape: s32[1], index: 0, kind: input, shape index: {}]   ;;  %s11085_s1 = inlined_call_operand.hbm [shape: f32[8,16,16], index: 1, kind: input, shape index: {}]   ;;  %s11086_s2 = inlined_call_operand.hbm [shape: f32[8,16,16], index: 2, kind: output, shape index: {}]  }
   0x1   :  { %9 = vsyncpa [#allocation6], 0  ;;  %s10346_s9 = smov [#allocation4]   ;;  %s10298_s13 = scalar_lea.hbm %s11085_s1, 2048 }
   0x2   :  { %s15_s10 = sshll.u32 %s10346_s9, 4  ;;  %p10299_p0 = scmp.ne.s32.totalorder %s11085_s1, %s10298_s13  ;;  %s16_s10 = int_to_ptr.vmem [resolvable:$true] %s15_s10 }
   0x3   :  { %p10302_p1 = scmp.lt.u32.totalorder %s10298_s13, %s11085_s1 }
   0x5   :  { %p10304_p2 = pnand %p10302_p1, %p10299_p0 }
   0x7   :  { %10307 = shalt.err (!%p10304_p2)
}
   0x8   :  { %s10308_s18 = scalar_lea.vmem %s16_s10, 2048  ;;  %p10313_p4 = scmp.lt.s32.totalorder %s16_s10, %s16_s10 }
   0x9   :  { %p10309_p3 = scmp.ne.s32.totalorder %s16_s10, %s10308_s18  ;;  %p10314_p5 = scmp.lt.s32.totalorder %s10308_s18, %s10308_s18 }
   0xb   :  { %p10315_p6 = por %p10314_p5, %p10313_p4 }
   0xd   :  { %p10316_p7 = pnand %p10315_p6, %p10309_p3 }
   0xf   :  { %10319 = shalt.err (!%p10316_p7)
}
  0x10   :  { %s10347_s19 = smov 128   ;;  %s10348_s20 = smov 8  }
  0x11   :  { %21 = dma.hbm_to_vmem [thread:$0]  %s11085_s1, 2048, %s16_s10, [#allocation5], %s10347_s19, %s10347_s19, %s10348_s20  }
  0x12   :  { %10342 = dma.done.wait [#allocation5], 2048  }
  0x13   :  { %10343 = vsyncadd [#allocation5], 4294965248  ;;  %p8589_p8 = scmp.ne.s32.totalorder %s11084_s0, 1 }
  0x14   :  { %v30_v0 = vld [vmem:[#allocation4] sm:$0xff] (!%p8589_p8)  ;;  %vm46_vm0 = vcmask (!%p8589_p8), 130048   ;;  %v31_v1 = vld [vmem:[#allocation4 + $0x8] sm:$0xff] (!%p8589_p8)  ;;  %v32_v2 = vld [vmem:[#allocation4 + $0x10] sm:$0xff] (!%p8589_p8) }
  0x15   :  { %29 = sbr.rel (%p8589_p8) target bundleno = 29 (0x1d), region = 13  ;;  %47 = vst.msk [vmem:[#allocation7] sm:$0xff] (!%p8589_p8), %vm46_vm0, %v30_v0  ;;  %48 = vst.msk [vmem:[#allocation7 + $0x8] sm:$0xff] (!%p8589_p8), %vm46_vm0, %v31_v1  ;;  %v33_v3 = vld [vmem:[#allocation4 + $0x18] sm:$0xff] (!%p8589_p8)  ;;  %v34_v4 = vld [vmem:[#allocation4 + $0x20] sm:$0xff] (!%p8589_p8) }
  0x16   :  { %49 = vst.msk [vmem:[#allocation7 + $0x10] sm:$0xff] (!%p8589_p8), %vm46_vm0, %v32_v2  ;;  %v35_v5 = vld [vmem:[#allocation4 + $0x28] sm:$0xff] (!%p8589_p8)  ;;  %50 = vst.msk [vmem:[#allocation7 + $0x18] sm:$0xff] (!%p8589_p8), %vm46_vm0, %v33_v3  ;;  %v36_v6 = vld [vmem:[#allocation4 + $0x30] sm:$0xff] (!%p8589_p8) }
  0x17   :  { %51 = vst.msk [vmem:[#allocation7 + $0x20] sm:$0xff] (!%p8589_p8), %vm46_vm0, %v34_v4  ;;  %52 = vst.msk [vmem:[#allocation7 + $0x28] sm:$0xff] (!%p8589_p8), %vm46_vm0, %v35_v5  ;;  %v37_v7 = vld [vmem:[#allocation4 + $0x38] sm:$0xff] (!%p8589_p8)  ;;  %v38_v8 = vld [vmem:[#allocation4 + $0x40] sm:$0xff] (!%p8589_p8) }
  0x18   :  { %53 = vst.msk [vmem:[#allocation7 + $0x30] sm:$0xff] (!%p8589_p8), %vm46_vm0, %v36_v6  ;;  %54 = vst.msk [vmem:[#allocation7 + $0x38] sm:$0xff] (!%p8589_p8), %vm46_vm0, %v37_v7  ;;  %v39_v9 = vld [vmem:[#allocation4 + $0x48] sm:$0xff] (!%p8589_p8)  ;;  %v40_v10 = vld [vmem:[#allocation4 + $0x50] sm:$0xff] (!%p8589_p8) }
  0x19   :  { %55 = vst.msk [vmem:[#allocation7 + $0x40] sm:$0xff] (!%p8589_p8), %vm46_vm0, %v38_v8  ;;  %v41_v11 = vld [vmem:[#allocation4 + $0x58] sm:$0xff] (!%p8589_p8)  ;;  %56 = vst.msk [vmem:[#allocation7 + $0x48] sm:$0xff] (!%p8589_p8), %vm46_vm0, %v39_v9  ;;  %v42_v12 = vld [vmem:[#allocation4 + $0x60] sm:$0xff] (!%p8589_p8) }
  0x1a   :  { %57 = vst.msk [vmem:[#allocation7 + $0x50] sm:$0xff] (!%p8589_p8), %vm46_vm0, %v40_v10  ;;  %58 = vst.msk [vmem:[#allocation7 + $0x58] sm:$0xff] (!%p8589_p8), %vm46_vm0, %v41_v11  ;;  %v43_v13 = vld [vmem:[#allocation4 + $0x68] sm:$0xff] (!%p8589_p8)  ;;  %v44_v14 = vld [vmem:[#allocation4 + $0x70] sm:$0xff] (!%p8589_p8) }
  0x1b   :  { %59 = vst.msk [vmem:[#allocation7 + $0x60] sm:$0xff] (!%p8589_p8), %vm46_vm0, %v42_v12  ;;  %60 = vst.msk [vmem:[#allocation7 + $0x68] sm:$0xff] (!%p8589_p8), %vm46_vm0, %v43_v13  ;;  %v45_v15 = vld [vmem:[#allocation4 + $0x78] sm:$0xff] (!%p8589_p8) }
  0x1c   :  { %61 = vst.msk [vmem:[#allocation7 + $0x70] sm:$0xff] %vm46_vm0, %v44_v14  ;;  %62 = vst.msk [vmem:[#allocation7 + $0x78] sm:$0xff] %vm46_vm0, %v45_v15 }
  0x1d PF:  { %p8590_p9 = scmp.eq.s32.totalorder %s11084_s0, 1 }
  0x1e   :  { %v67_v16 = vlaneseq (!%p8590_p9)  ;;  %v10349_v22 = vmov (!%p8590_p9), 0.0   ;;  %p8593_p10 = scmp.ne.s32.totalorder (!%p8590_p9), %s11084_s0, 0 }
  0x1f   :  { %66 = sbr.rel (%p8590_p9) target bundleno = 983 (0x3d7), region = 17 }
  0x20   :  { %v68_v17 = vshrl.u32 (!%p8590_p9), %v67_v16, 7  ;;  %v71_v18 = vand.u32 (!%p8590_p9), 127, %v67_v16 }
  0x22   :  { %v69_v19 = vadd.s32 (!%p8590_p9), 8, %v68_v17  ;;  %v72_v20 = vadd.s32 (!%p8590_p9), %v71_v18, %v68_v17 }
  0x24   :  { %v73_v21 = vadd.s32 (!%p8590_p9), %v71_v18, %v69_v19  ;;  %vm74_vm1 = vcmp.eq.s32.totalorder (!%p8590_p9), %v72_v20, 15 }
  0x25   :  { %v10405_v23 = vsel (!%p8590_p9), %vm74_vm1, 1.0, %v10349_v22 }
  0x26   :  { %vm75_vm2 = vcmp.eq.s32.totalorder %v73_v21, 15  ;;  %83 = sbr.rel (%p8593_p10) target bundleno = 569 (0x239), region = 21  ;;  %v630_v25 = vld [vmem:[#allocation4 + $0x10] sm:$0xff] (!%p8593_p10)  ;;  %v84_v26 = vld [vmem:[#allocation4] sm:$0xff] (!%p8593_p10)  ;;  %v631_v27 = vld [vmem:[#allocation4 + $0x18] sm:$0xff] (!%p8593_p10)  ;;  %v214_v34 = vsub.f32 (!%p8593_p10), %v10405_v23, %v10405_v23  ;;  %vm118_vm4 = vcmask (!%p8593_p10), 130048  }
  0x27   :  { %v10408_v24 = vsel %vm75_vm2, 1.0, %v10349_v22  ;;  %632 = vxpose.xlu1.b32.start [1/2] (short) (narrow) (!%p8593_p10), %v630_v25, 16  ;;  %86 = vxpose.xlu0.b32.start [1/2] (short) (narrow) (!%p8593_p10), %v84_v26, 16  ;;  %v85_v28 = vld [vmem:[#allocation4 + $0x8] sm:$0xff] (!%p8593_p10)  ;;  %v1722_v29 = vld [vmem:[#allocation4 + $0x30] sm:$0xff] (!%p8593_p10)  ;;  %v1176_v30 = vld [vmem:[#allocation4 + $0x20] sm:$0xff] (!%p8593_p10) }
  0x28   :  { %v1723_v31 = vld [vmem:[#allocation4 + $0x38] sm:$0xff] (!%p8593_p10)  ;;  %v1177_v32 = vld [vmem:[#allocation4 + $0x28] sm:$0xff] (!%p8593_p10)  ;;  %vm10415_vm3 = vmpackc.low (!%p8593_p10), %vm75_vm2, %vm74_vm1  ;;  %v221_v35 = vsub.f32 (!%p8593_p10), %v10408_v24, %v10408_v24  ;;  %v10350_v36 = vmov (!%p8593_p10), 1.0|1.0   ;;  %v215_v37 = vand.u32 (!%p8593_p10), 4294901760, %v214_v34 }
  0x29   :  { %9748 = vmatprep.subr.msk.bf16.mxu0 (!%p8593_p10), %vm10415_vm3, %v10350_v36  ;;  %9772 = vmatprep.subr.msk.bf16.mxu1 (!%p8593_p10), %vm10415_vm3, %v10350_v36  ;;  %v2814_v39 = vld [vmem:[#allocation4 + $0x50] sm:$0xff] (!%p8593_p10)  ;;  %v2268_v40 = vld [vmem:[#allocation4 + $0x40] sm:$0xff] (!%p8593_p10)  ;;  %v2815_v45 = vld [vmem:[#allocation4 + $0x58] sm:$0xff] (!%p8593_p10) }
  0x2a   :  { %v222_v38 = vand.u32 (!%p8593_p10), 4294901760, %v221_v35  ;;  %9750 = vmatpush3.bf16.msk.msra.mxu0 (!%p8593_p10), %vm10415_vm3, %v10350_v36  ;;  %9774 = vmatpush3.bf16.msk.msra.mxu1 (!%p8593_p10), %vm10415_vm3, %v10350_v36  ;;  %v216_v41 = vsub.f32 (!%p8593_p10), %v214_v34, %v215_v37  ;;  %v2269_v46 = vld [vmem:[#allocation4 + $0x48] sm:$0xff] (!%p8593_p10)  ;;  %v10437_v48 = vpack.c.bf16 (!%p8593_p10), %v221_v35, %v214_v34  ;;  %v3906_v49 = vld [vmem:[#allocation4 + $0x70] sm:$0xff] (!%p8593_p10)  ;;  %v3360_v50 = vld [vmem:[#allocation4 + $0x60] sm:$0xff] (!%p8593_p10) }
  0x2b   :  { %633 = vxpose.xlu1.b32.end [2/2] (short) (narrow) (!%p8593_p10), %v631_v27, 16  ;;  %87 = vxpose.xlu0.b32.end [2/2] (short) (narrow) (!%p8593_p10), %v85_v28, 16  ;;  %v3907_v51 = vld [vmem:[#allocation4 + $0x78] sm:$0xff] (!%p8593_p10)  ;;  %v3361_v52 = vld [vmem:[#allocation4 + $0x68] sm:$0xff] (!%p8593_p10) }
  0x2c   :  { %v223_v42 = vsub.f32 (!%p8593_p10), %v221_v35, %v222_v38  ;;  %v217_v43 = vand.u32 (!%p8593_p10), 4294901760, %v216_v41  ;;  %v10441_v53 = vpack.c.bf16 (!%p8593_p10), %v222_v38, %v215_v37 }
  0x2e   :  { %v224_v44 = vand.u32 4294901760, %v223_v42 }
  0x2f   :  { %1724 = vxpose.xlu1.b32.start [1/2] (short) (narrow) %v1722_v29, 16  ;;  %1178 = vxpose.xlu0.b32.start [1/2] (short) (narrow) %v1176_v30, 16 }
  0x30   :  { %v10435_v47 = vpack.c.bf16 %v224_v44, %v217_v43 }
  0x32   :  { %9752 = vmatprep.subr.bf16.mxu0 %v10435_v47  ;;  %9776 = vmatprep.subr.bf16.mxu1 %v10435_v47 }
  0x33   :  { %1725 = vxpose.xlu1.b32.end [2/2] (short) (narrow) %v1723_v31, 16  ;;  %1179 = vxpose.xlu0.b32.end [2/2] (short) (narrow) %v1177_v32, 16 }
  0x37   :  { %2816 = vxpose.xlu1.b32.start [1/2] (short) (narrow) %v2814_v39, 16  ;;  %2270 = vxpose.xlu0.b32.start [1/2] (short) (narrow) %v2268_v40, 16 }
  0x3b   :  { %2817 = vxpose.xlu1.b32.end [2/2] (short) (narrow) %v2815_v45, 16  ;;  %2271 = vxpose.xlu0.b32.end [2/2] (short) (narrow) %v2269_v46, 16 }
  0x3f   :  { %3908 = vxpose.xlu1.b32.start [1/2] (short) (narrow) %v3906_v49, 16  ;;  %3362 = vxpose.xlu0.b32.start [1/2] (short) (narrow) %v3360_v50, 16 }
  0x43   :  { %3909 = vxpose.xlu1.b32.end [2/2] (short) (narrow) %v3907_v51, 16  ;;  %3363 = vxpose.xlu0.b32.end [2/2] (short) (narrow) %v3361_v52, 16 }
  0xa7   :  { %v648_v54 = vpop.trf.xlu1  ;;  %v102_v55 = vpop.trf.xlu0 }
  0xa8   :  { %v665_v56 = vsel %vm118_vm4, %v648_v54, 0  ;;  %v120_v57 = vsel %vm118_vm4, %v102_v55, 0 }
  0xa9   :  { %v10445_v58 = vand.u32 4294901760, %v665_v56  ;;  %v10447_v59 = vand.u32 4294901760, %v120_v57 }
  0xab   :  { %v738_v60 = vsub.f32 %v665_v56, %v10445_v58  ;;  %v193_v61 = vsub.f32 %v120_v57, %v10447_v59  ;;  %v649_v62 = vpop.trf.xlu1  ;;  %v103_v63 = vpop.trf.xlu0 }
  0xac   :  { %v668_v0 = vsel %vm118_vm4, %v649_v62, 0  ;;  %v123_v1 = vsel %vm118_vm4, %v103_v63, 0 }
  0xad   :  { %v10453_v2 = vand.u32 4294901760, %v668_v0  ;;  %v10455_v3 = vand.u32 4294901760, %v123_v1  ;;  %v194_v4 = vand.u32 4294901760, %v193_v61  ;;  %v739_v5 = vand.u32 4294901760, %v738_v60 }
  0xaf   :  { %v748_v6 = vsub.f32 %v668_v0, %v10453_v2  ;;  %v203_v7 = vsub.f32 %v123_v1, %v10455_v3  ;;  %v195_v8 = vsub.f32 %v193_v61, %v194_v4  ;;  %v740_v9 = vsub.f32 %v738_v60, %v739_v5  ;;  %v1740_v18 = vpop.trf.xlu1  ;;  %v1194_v19 = vpop.trf.xlu0 }
  0xb0   :  { %v1757_v22 = vsel %vm118_vm4, %v1740_v18, 0  ;;  %v1211_v25 = vsel %vm118_vm4, %v1194_v19, 0 }
  0xb1   :  { %v749_v10 = vand.u32 4294901760, %v748_v6  ;;  %v204_v11 = vand.u32 4294901760, %v203_v7  ;;  %v196_v12 = vand.u32 4294901760, %v195_v8  ;;  %v741_v13 = vand.u32 4294901760, %v740_v9 }
  0xb2   :  { %v10487_v28 = vand.u32 4294901760, %v1757_v22  ;;  %v10489_v29 = vand.u32 4294901760, %v1211_v25 }
  0xb3   :  { %9079 = vmatprep.mubr.f32.mxu0 %v196_v12  ;;  %9121 = vmatprep.mubr.f32.mxu1 %v741_v13  ;;  %v205_v14 = vsub.f32 %v203_v7, %v204_v11  ;;  %v750_v15 = vsub.f32 %v748_v6, %v749_v10  ;;  %v1741_v20 = vpop.trf.xlu1  ;;  %v1195_v21 = vpop.trf.xlu0 }
  0xb4   :  { %v1760_v26 = vsel %vm118_vm4, %v1741_v20, 0  ;;  %v1214_v27 = vsel %vm118_vm4, %v1195_v21, 0  ;;  %v1830_v32 = vsub.f32 %v1757_v22, %v10487_v28  ;;  %v1284_v34 = vsub.f32 %v1211_v25, %v10489_v29 }
  0xb5   :  { %v206_v16 = vand.u32 4294901760, %v205_v14  ;;  %v751_v17 = vand.u32 4294901760, %v750_v15  ;;  %v10495_v30 = vand.u32 4294901760, %v1760_v26  ;;  %v10497_v31 = vand.u32 4294901760, %v1214_v27 }
  0xb6   :  { %v1831_v38 = vand.u32 4294901760, %v1830_v32  ;;  %v1285_v39 = vand.u32 4294901760, %v1284_v34 }
  0xb7   :  { %9080 = vmatmul.mubr.f32.vlgmr.msra.gmra.mrb[0].mxu0 %v206_v16  ;;  %9122 = vmatmul.mubr.f32.vlgmr.msra.gmra.mrb[0].mxu1 %v751_v17  ;;  %v10508_v35 = vsub.f32 %v1760_v26, %v10495_v30  ;;  %v1294_v37 = vsub.f32 %v1214_v27, %v10497_v31  ;;  %v2832_v52 = vpop.trf.xlu1  ;;  %v2286_v54 = vpop.trf.xlu0 }
  0xb8   :  { %9754 = vmatpush3.bf16.msra.mxu0 %v10435_v47  ;;  %9778 = vmatpush3.bf16.msra.mxu1 %v10435_v47  ;;  %v1286_v42 = vsub.f32 %v1284_v34, %v1285_v39  ;;  %v1832_v43 = vsub.f32 %v1830_v32, %v1831_v38  ;;  %v2849_v57 = vsel %vm118_vm4, %v2832_v52, 0 }
  0xb9   :  { %9086 = vmatprep.mubr.f32.mxu0 %v10447_v59  ;;  %9128 = vmatprep.mubr.f32.mxu1 %v10445_v58  ;;  %v1841_v40 = vand.u32 4294901760, %v10508_v35  ;;  %v1295_v41 = vand.u32 4294901760, %v1294_v37 }
  0xba   :  { %9756 = vmatprep.subr.bf16.mxu0 %v10437_v48  ;;  %9780 = vmatprep.subr.bf16.mxu1 %v10437_v48  ;;  %v1287_v46 = vand.u32 4294901760, %v1286_v42  ;;  %v1833_v49 = vand.u32 4294901760, %v1832_v43 }
  0xbb   :  { %v1842_v44 = vsub.f32 %v10508_v35, %v1841_v40  ;;  %v1296_v45 = vsub.f32 %v1294_v37, %v1295_v41  ;;  %v2833_v55 = vpop.trf.xlu1  ;;  %v2287_v56 = vpop.trf.xlu0 }
  0xbd   :  { %v1843_v50 = vand.u32 4294901760, %v1842_v44  ;;  %v1297_v51 = vand.u32 4294901760, %v1296_v45 }
  0xbf   :  { %9087 = vmatmul.mubr.f32.vlgmr.msra.gmra.mrb[0].mxu0 %v10455_v3  ;;  %9129 = vmatmul.mubr.f32.vlgmr.msra.gmra.mrb[0].mxu1 %v10453_v2  ;;  %v3924_v17 = vpop.trf.xlu1  ;;  %v3378_v18 = vpop.trf.xlu0 }
  0xc0   :  { %9758 = vmatpush3.bf16.msra.mxu0 %v10437_v48  ;;  %9782 = vmatpush3.bf16.msra.mxu1 %v10437_v48  ;;  %v3941_v21 = vsel %vm118_vm4, %v3924_v17, 0  ;;  %v3395_v22 = vsel %vm118_vm4, %v3378_v18, 0 }
  0xc1   :  { %9093 = vmatprep.mubr.f32.mxu0 %v193_v61  ;;  %9135 = vmatprep.mubr.f32.mxu1 %v738_v60  ;;  %v2306_v60 = vsel %vm118_vm4, %v2287_v56, 0  ;;  %v10568_v61 = vand.u32 4294901760, %v2849_v57  ;;  %v10649_v27 = vand.u32 4294901760, %v3941_v21 }
  0xc2   :  { %9760 = vmatprep.subr.msk.bf16.mxu0 %vm10415_vm3, %v10350_v36  ;;  %9784 = vmatprep.subr.msk.bf16.mxu1 %vm10415_vm3, %v10350_v36  ;;  %v10578_v0 = vand.u32 4294901760, %v2306_v60 }
  0xc3   :  { %v2922_v1 = vsub.f32 %v2849_v57, %v10568_v61  ;;  %v3925_v19 = vpop.trf.xlu1  ;;  %v3379_v20 = vpop.trf.xlu0 }
  0xc4   :  { %v3944_v25 = vsel %vm118_vm4, %v3925_v19, 0  ;;  %v3398_v26 = vsel %vm118_vm4, %v3379_v20, 0 }
  0xc7   :  { %9094 = vmatmul.mubr.f32.vlgmr.msra.gmra.mrb[0].mxu0 %v203_v7  ;;  %9136 = vmatmul.mubr.f32.vlgmr.msra.gmra.mrb[0].mxu1 %v748_v6 }
  0xc8   :  { %9762 = vmatpush3.bf16.msk.msra.mxu0 %vm10415_vm3, %v10350_v36  ;;  %9786 = vmatpush3.bf16.msk.msra.mxu1 %vm10415_vm3, %v10350_v36 }
  0xc9   :  { %9100 = vmatprep.mubr.f32.mxu0 %v194_v4  ;;  %9142 = vmatprep.mubr.f32.mxu1 %v739_v5  ;;  %v2386_v4 = vsub.f32 %v2306_v60, %v10578_v0  ;;  %v2923_v5 = vand.u32 4294901760, %v2922_v1 }
  0xca   :  { %9764 = vmatprep.subr.bf16.mxu0 %v10441_v53  ;;  %9788 = vmatprep.subr.bf16.mxu1 %v10441_v53 }
  0xcb   :  { %v2387_v8 = vand.u32 4294901760, %v2386_v4 }
  0xcd   :  { %v2388_v12 = vsub.f32 %v2386_v4, %v2387_v8 }
  0xcf   :  { %9101 = vmatmul.mubr.f32.vlgmr.msra.gmra.mrb[0].mxu0 %v204_v11  ;;  %9143 = vmatmul.mubr.f32.vlgmr.msra.gmra.mrb[0].mxu1 %v749_v10  ;;  %v2924_v10 = vsub.f32 %v2922_v1, %v2923_v5  ;;  %v2389_v16 = vand.u32 4294901760, %v2388_v12 }
  0xd0   :  { %9766 = vmatpush3.bf16.msra.mxu0 %v10441_v53  ;;  %9790 = vmatpush3.bf16.msra.mxu1 %v10441_v53 }
  0xd1   :  { %9107 = vmatprep.mubr.f32.mxu0 %v10447_v59  ;;  %9149 = vmatprep.mubr.f32.mxu1 %v10445_v58  ;;  %v2925_v14 = vand.u32 4294901760, %v2924_v10 }
  0xd2   :  { %9768 = vmatprep.subr.msk.bf16.mxu0 %vm10415_vm3, %v10350_v36  ;;  %9792 = vmatprep.subr.msk.bf16.mxu1 %vm10415_vm3, %v10350_v36 }
  0xd7   :  { %9108 = vmatmul.mubr.f32.vlgmr.msra.gmra.mrb[0].mxu0 %v10455_v3  ;;  %9150 = vmatmul.mubr.f32.vlgmr.msra.gmra.mrb[0].mxu1 %v10453_v2 }
  0xd8   :  { %9770 = vmatpush3.bf16.msk.msra.mxu0 %vm10415_vm3, %v10350_v36  ;;  %9794 = vmatpush3.bf16.msk.msra.mxu1 %vm10415_vm3, %v10350_v36 }
  0xd9   :  { %9114 = vmatprep.mubr.f32.mxu0 %v10447_v59  ;;  %9156 = vmatprep.mubr.f32.mxu1 %v10445_v58  ;;  %v2303_v58 = vsel %vm118_vm4, %v2286_v54, 0  ;;  %v2852_v59 = vsel %vm118_vm4, %v2833_v55, 0 }
  0xda   :  { %9796 = vmatprep.subr.msk.bf16.mxu0 %vm10415_vm3, %v10350_v36  ;;  %9820 = vmatprep.subr.msk.bf16.mxu1 %vm10415_vm3, %v10350_v36  ;;  %v10570_v62 = vand.u32 4294901760, %v2303_v58  ;;  %v10576_v63 = vand.u32 4294901760, %v2852_v59 }
  0xdf   :  { %9115 = vmatmul.mubr.f32.vlgmr.msra.gmra.mrb[0].mxu0 %v10455_v3  ;;  %9157 = vmatmul.mubr.f32.vlgmr.msra.gmra.mrb[0].mxu1 %v10453_v2  ;;  %v2376_v2 = vsub.f32 %v2303_v58, %v10570_v62  ;;  %v10589_v3 = vsub.f32 %v2852_v59, %v10576_v63 }
  0xe0   :  { %9798 = vmatpush3.bf16.msk.msra.mxu0 %vm10415_vm3, %v10350_v36  ;;  %9822 = vmatpush3.bf16.msk.msra.mxu1 %vm10415_vm3, %v10350_v36 }
  0xe1   :  { %9163 = vmatprep.mubr.f32.mxu0 %v1287_v46  ;;  %9205 = vmatprep.mubr.f32.mxu1 %v1833_v49  ;;  %v2377_v6 = vand.u32 4294901760, %v2376_v2  ;;  %v2933_v7 = vand.u32 4294901760, %v10589_v3 }
  0xe2   :  { %9800 = vmatprep.subr.bf16.mxu0 %v10435_v47  ;;  %9824 = vmatprep.subr.bf16.mxu1 %v10435_v47 }
  0xe3   :  { %9164 = vmatmul.mubr.f32.vlgmr.msra.gmra.mrb[2].mxu0 %v1297_v51  ;;  %9206 = vmatmul.mubr.f32.vlgmr.msra.gmra.mrb[2].mxu1 %v1843_v50  ;;  %v2378_v9 = vsub.f32 %v2376_v2, %v2377_v6  ;;  %v2934_v11 = vsub.f32 %v10589_v3, %v2933_v7 }
  0xe4   :  { %9802 = vmatpush3.bf16.msra.mxu0 %v10435_v47  ;;  %9826 = vmatpush3.bf16.msra.mxu1 %v10435_v47 }
  0xe5   :  { %9170 = vmatprep.mubr.f32.mxu0 %v10489_v29  ;;  %9212 = vmatprep.mubr.f32.mxu1 %v10487_v28  ;;  %v2379_v13 = vand.u32 4294901760, %v2378_v9  ;;  %v2935_v15 = vand.u32 4294901760, %v2934_v11 }
  0xe6   :  { %9804 = vmatprep.subr.bf16.mxu0 %v10437_v48  ;;  %9828 = vmatprep.subr.bf16.mxu1 %v10437_v48 }
  0xeb   :  { %9171 = vmatmul.mubr.f32.vlgmr.msra.gmra.mrb[2].mxu0 %v10497_v31  ;;  %9213 = vmatmul.mubr.f32.vlgmr.msra.gmra.mrb[2].mxu1 %v10495_v30 }
  0xec   :  { %9806 = vmatpush3.bf16.msra.mxu0 %v10437_v48  ;;  %9830 = vmatpush3.bf16.msra.mxu1 %v10437_v48 }
  0xed   :  { %9177 = vmatprep.mubr.f32.mxu0 %v1284_v34  ;;  %9219 = vmatprep.mubr.f32.mxu1 %v1830_v32 }
  0xee   :  { %9808 = vmatprep.subr.msk.bf16.mxu0 %vm10415_vm3, %v10350_v36  ;;  %9832 = vmatprep.subr.msk.bf16.mxu1 %vm10415_vm3, %v10350_v36 }
  0xf3   :  { %9178 = vmatmul.mubr.f32.vlgmr.msra.gmra.mrb[2].mxu0 %v1294_v37  ;;  %9220 = vmatmul.mubr.f32.vlgmr.msra.gmra.mrb[2].mxu1 %v10508_v35 }
  0xf4   :  { %9810 = vmatpush3.bf16.msk.msra.mxu0 %vm10415_vm3, %v10350_v36  ;;  %9834 = vmatpush3.bf16.msk.msra.mxu1 %vm10415_vm3, %v10350_v36 }
  0xf5   :  { %9184 = vmatprep.mubr.f32.mxu0 %v1285_v39  ;;  %9226 = vmatprep.mubr.f32.mxu1 %v1831_v38 }
  0xf6   :  { %9812 = vmatprep.subr.bf16.mxu0 %v10441_v53  ;;  %9836 = vmatprep.subr.bf16.mxu1 %v10441_v53 }
  0xfb   :  { %9185 = vmatmul.mubr.f32.vlgmr.msra.gmra.mrb[2].mxu0 %v1295_v41  ;;  %9227 = vmatmul.mubr.f32.vlgmr.msra.gmra.mrb[2].mxu1 %v1841_v40 }
  0xfc   :  { %9814 = vmatpush3.bf16.msra.mxu0 %v10441_v53  ;;  %9838 = vmatpush3.bf16.msra.mxu1 %v10441_v53 }
  0xfd   :  { %9191 = vmatprep.mubr.f32.mxu0 %v10489_v29  ;;  %9233 = vmatprep.mubr.f32.mxu1 %v10487_v28 }
  0xfe   :  { %9816 = vmatprep.subr.msk.bf16.mxu0 %vm10415_vm3, %v10350_v36  ;;  %9840 = vmatprep.subr.msk.bf16.mxu1 %vm10415_vm3, %v10350_v36 }
 0x103   :  { %9192 = vmatmul.mubr.f32.vlgmr.msra.gmra.mrb[2].mxu0 %v10497_v31  ;;  %9234 = vmatmul.mubr.f32.vlgmr.msra.gmra.mrb[2].mxu1 %v10495_v30 }
 0x104   :  { %9818 = vmatpush3.bf16.msk.msra.mxu0 %vm10415_vm3, %v10350_v36  ;;  %9842 = vmatpush3.bf16.msk.msra.mxu1 %vm10415_vm3, %v10350_v36 }
 0x105   :  { %9198 = vmatprep.mubr.f32.mxu0 %v10489_v29  ;;  %9240 = vmatprep.mubr.f32.mxu1 %v10487_v28  ;;  %v10651_v28 = vand.u32 4294901760, %v3395_v22  ;;  %v10657_v29 = vand.u32 4294901760, %v3944_v25 }
 0x106   :  { %9844 = vmatprep.subr.msk.bf16.mxu0 %vm10415_vm3, %v10350_v36  ;;  %9868 = vmatprep.subr.msk.bf16.mxu1 %vm10415_vm3, %v10350_v36 }
 0x107   :  { %v3468_v32 = vsub.f32 %v3395_v22, %v10651_v28  ;;  %v4024_v34 = vsub.f32 %v3944_v25, %v10657_v29 }
 0x109   :  { %v3469_v38 = vand.u32 4294901760, %v3468_v32  ;;  %v4025_v39 = vand.u32 4294901760, %v4024_v34 }
 0x10b   :  { %9199 = vmatmul.mubr.f32.vlgmr.msra.gmra.mrb[2].mxu0 %v10497_v31  ;;  %9241 = vmatmul.mubr.f32.vlgmr.msra.gmra.mrb[2].mxu1 %v10495_v30  ;;  %v10659_v30 = vand.u32 4294901760, %v3398_v26  ;;  %v4014_v31 = vsub.f32 %v3941_v21, %v10649_v27  ;;  %v3470_v41 = vsub.f32 %v3468_v32, %v3469_v38  ;;  %v4026_v43 = vsub.f32 %v4024_v34, %v4025_v39 }
 0x10c   :  { %9846 = vmatpush3.bf16.msk.msra.mxu0 %vm10415_vm3, %v10350_v36  ;;  %9870 = vmatpush3.bf16.msk.msra.mxu1 %vm10415_vm3, %v10350_v36 }
 0x10d   :  { %9247 = vmatprep.mubr.f32.mxu0 %v2379_v13  ;;  %9289 = vmatprep.mubr.f32.mxu1 %v2925_v14  ;;  %v3478_v35 = vsub.f32 %v3398_v26, %v10659_v30  ;;  %v4015_v37 = vand.u32 4294901760, %v4014_v31  ;;  %v3471_v45 = vand.u32 4294901760, %v3470_v41  ;;  %v4027_v49 = vand.u32 4294901760, %v4026_v43 }
 0x10e   :  { %9848 = vmatprep.subr.bf16.mxu0 %v10435_v47  ;;  %9872 = vmatprep.subr.bf16.mxu1 %v10435_v47 }
 0x10f   :  { %9248 = vmatmul.mubr.f32.vlgmr.msra.gmra.mrb[4].mxu0 %v2389_v16  ;;  %9290 = vmatmul.mubr.f32.vlgmr.msra.gmra.mrb[4].mxu1 %v2935_v15  ;;  %v3479_v40 = vand.u32 4294901760, %v3478_v35  ;;  %v4016_v42 = vsub.f32 %v4014_v31, %v4015_v37 }
 0x110   :  { %9850 = vmatpush3.bf16.msra.mxu0 %v10435_v47  ;;  %9874 = vmatpush3.bf16.msra.mxu1 %v10435_v47 }
 0x111   :  { %9254 = vmatprep.mubr.f32.mxu0 %v10570_v62  ;;  %9296 = vmatprep.mubr.f32.mxu1 %v10568_v61  ;;  %v3480_v44 = vsub.f32 %v3478_v35, %v3479_v40  ;;  %v4017_v46 = vand.u32 4294901760, %v4016_v42 }
 0x112   :  { %9852 = vmatprep.subr.bf16.mxu0 %v10437_v48  ;;  %9876 = vmatprep.subr.bf16.mxu1 %v10437_v48 }
 0x113   :  { %v3481_v50 = vand.u32 4294901760, %v3480_v44 }
 0x117   :  { %9255 = vmatmul.mubr.f32.vlgmr.msra.gmra.mrb[4].mxu0 %v10578_v0  ;;  %9297 = vmatmul.mubr.f32.vlgmr.msra.gmra.mrb[4].mxu1 %v10576_v63 }
 0x118   :  { %9854 = vmatpush3.bf16.msra.mxu0 %v10437_v48  ;;  %9878 = vmatpush3.bf16.msra.mxu1 %v10437_v48 }
 0x119   :  { %9261 = vmatprep.mubr.f32.mxu0 %v2376_v2  ;;  %9303 = vmatprep.mubr.f32.mxu1 %v2922_v1 }
 0x11a   :  { %9856 = vmatprep.subr.msk.bf16.mxu0 %vm10415_vm3, %v10350_v36  ;;  %9880 = vmatprep.subr.msk.bf16.mxu1 %vm10415_vm3, %v10350_v36 }
 0x11f   :  { %9262 = vmatmul.mubr.f32.vlgmr.msra.gmra.mrb[4].mxu0 %v2386_v4  ;;  %9304 = vmatmul.mubr.f32.vlgmr.msra.gmra.mrb[4].mxu1 %v10589_v3 }
 0x120   :  { %9858 = vmatpush3.bf16.msk.msra.mxu0 %vm10415_vm3, %v10350_v36  ;;  %9882 = vmatpush3.bf16.msk.msra.mxu1 %vm10415_vm3, %v10350_v36 }
 0x121   :  { %9268 = vmatprep.mubr.f32.mxu0 %v2377_v6  ;;  %9310 = vmatprep.mubr.f32.mxu1 %v2923_v5 }
 0x122   :  { %9860 = vmatprep.subr.bf16.mxu0 %v10441_v53  ;;  %9884 = vmatprep.subr.bf16.mxu1 %v10441_v53 }
 0x127   :  { %9269 = vmatmul.mubr.f32.vlgmr.msra.gmra.mrb[4].mxu0 %v2387_v8  ;;  %9311 = vmatmul.mubr.f32.vlgmr.msra.gmra.mrb[4].mxu1 %v2933_v7 }
 0x128   :  { %9862 = vmatpush3.bf16.msra.mxu0 %v10441_v53  ;;  %9886 = vmatpush3.bf16.msra.mxu1 %v10441_v53 }
 0x129   :  { %9275 = vmatprep.mubr.f32.mxu0 %v10570_v62  ;;  %9317 = vmatprep.mubr.f32.mxu1 %v10568_v61 }
 0x12a   :  { %9864 = vmatprep.subr.msk.bf16.mxu0 %vm10415_vm3, %v10350_v36  ;;  %9888 = vmatprep.subr.msk.bf16.mxu1 %vm10415_vm3, %v10350_v36 }
 0x12f   :  { %9276 = vmatmul.mubr.f32.vlgmr.msra.gmra.mrb[4].mxu0 %v10578_v0  ;;  %9318 = vmatmul.mubr.f32.vlgmr.msra.gmra.mrb[4].mxu1 %v10576_v63 }
 0x130   :  { %9866 = vmatpush3.bf16.msk.msra.mxu0 %vm10415_vm3, %v10350_v36  ;;  %9890 = vmatpush3.bf16.msk.msra.mxu1 %vm10415_vm3, %v10350_v36 }
 0x131   :  { %9282 = vmatprep.mubr.f32.mxu0 %v10570_v62  ;;  %9324 = vmatprep.mubr.f32.mxu1 %v10568_v61 }
 0x132   :  { %9892 = vmatprep.subr.msk.bf16.mxu0 %vm10415_vm3, %v10350_v36  ;;  %9916 = vmatprep.subr.msk.bf16.mxu1 %vm10415_vm3, %v10350_v36 }
 0x137   :  { %9283 = vmatmul.mubr.f32.vlgmr.msra.gmra.mrb[4].mxu0 %v10578_v0  ;;  %9325 = vmatmul.mubr.f32.vlgmr.msra.gmra.mrb[4].mxu1 %v10576_v63 }
 0x138   :  { %9894 = vmatpush3.bf16.msk.msra.mxu0 %vm10415_vm3, %v10350_v36  ;;  %9918 = vmatpush3.bf16.msk.msra.mxu1 %vm10415_vm3, %v10350_v36 }
 0x139   :  { %9331 = vmatprep.mubr.f32.mxu0 %v3471_v45  ;;  %9373 = vmatprep.mubr.f32.mxu1 %v4017_v46 }
 0x13a   :  { %9896 = vmatprep.subr.bf16.mxu0 %v10435_v47  ;;  %9920 = vmatprep.subr.bf16.mxu1 %v10435_v47 }
 0x13b   :  { %9332 = vmatmul.mubr.f32.vlgmr.msra.gmra.mrb[6].mxu0 %v3481_v50  ;;  %9374 = vmatmul.mubr.f32.vlgmr.msra.gmra.mrb[6].mxu1 %v4027_v49 }
 0x13c   :  { %9898 = vmatpush3.bf16.msra.mxu0 %v10435_v47  ;;  %9922 = vmatpush3.bf16.msra.mxu1 %v10435_v47 }
 0x13d   :  { %9338 = vmatprep.mubr.f32.mxu0 %v10651_v28  ;;  %9380 = vmatprep.mubr.f32.mxu1 %v10649_v27 }
 0x13e   :  { %9900 = vmatprep.subr.bf16.mxu0 %v10437_v48  ;;  %9924 = vmatprep.subr.bf16.mxu1 %v10437_v48 }
 0x143   :  { %9339 = vmatmul.mubr.f32.vlgmr.msra.gmra.mrb[6].mxu0 %v10659_v30  ;;  %9381 = vmatmul.mubr.f32.vlgmr.msra.gmra.mrb[6].mxu1 %v10657_v29 }
 0x144   :  { %9902 = vmatpush3.bf16.msra.mxu0 %v10437_v48  ;;  %9926 = vmatpush3.bf16.msra.mxu1 %v10437_v48 }
 0x145   :  { %9345 = vmatprep.mubr.f32.mxu0 %v3468_v32  ;;  %9387 = vmatprep.mubr.f32.mxu1 %v4014_v31 }
 0x146   :  { %9904 = vmatprep.subr.msk.bf16.mxu0 %vm10415_vm3, %v10350_v36  ;;  %9928 = vmatprep.subr.msk.bf16.mxu1 %vm10415_vm3, %v10350_v36 }
 0x14b   :  { %9346 = vmatmul.mubr.f32.vlgmr.msra.gmra.mrb[6].mxu0 %v3478_v35  ;;  %9388 = vmatmul.mubr.f32.vlgmr.msra.gmra.mrb[6].mxu1 %v4024_v34 }
 0x14c   :  { %9906 = vmatpush3.bf16.msk.msra.mxu0 %vm10415_vm3, %v10350_v36  ;;  %9930 = vmatpush3.bf16.msk.msra.mxu1 %vm10415_vm3, %v10350_v36 }
 0x14d   :  { %9352 = vmatprep.mubr.f32.mxu0 %v3469_v38  ;;  %9394 = vmatprep.mubr.f32.mxu1 %v4015_v37 }
 0x14e   :  { %9908 = vmatprep.subr.bf16.mxu0 %v10441_v53  ;;  %9932 = vmatprep.subr.bf16.mxu1 %v10441_v53 }
 0x153   :  { %9353 = vmatmul.mubr.f32.vlgmr.msra.gmra.mrb[6].mxu0 %v3479_v40  ;;  %9395 = vmatmul.mubr.f32.vlgmr.msra.gmra.mrb[6].mxu1 %v4025_v39 }
 0x154   :  { %9910 = vmatpush3.bf16.msra.mxu0 %v10441_v53  ;;  %9934 = vmatpush3.bf16.msra.mxu1 %v10441_v53 }
 0x155   :  { %9359 = vmatprep.mubr.f32.mxu0 %v10651_v28  ;;  %9401 = vmatprep.mubr.f32.mxu1 %v10649_v27 }
 0x156   :  { %9912 = vmatprep.subr.msk.bf16.mxu0 %vm10415_vm3, %v10350_v36  ;;  %9936 = vmatprep.subr.msk.bf16.mxu1 %vm10415_vm3, %v10350_v36 }
 0x15b   :  { %9360 = vmatmul.mubr.f32.vlgmr.msra.gmra.mrb[6].mxu0 %v10659_v30  ;;  %9402 = vmatmul.mubr.f32.vlgmr.msra.gmra.mrb[6].mxu1 %v10657_v29 }
 0x15c   :  { %9914 = vmatpush3.bf16.msk.msra.mxu0 %vm10415_vm3, %v10350_v36  ;;  %9938 = vmatpush3.bf16.msk.msra.mxu1 %vm10415_vm3, %v10350_v36 }
 0x15d   :  { %9366 = vmatprep.mubr.f32.mxu0 %v10651_v28  ;;  %9408 = vmatprep.mubr.f32.mxu1 %v10649_v27 }
 0x163   :  { %9367 = vmatmul.mubr.f32.vlgmr.msra.gmra.mrb[6].mxu0 %v10659_v30  ;;  %9409 = vmatmul.mubr.f32.vlgmr.msra.gmra.mrb[6].mxu1 %v10657_v29 }
 0x1b2   :  { %v9116_v47 = vpop.f32.mrb[0].mxu0  ;;  %v9158_v48 = vpop.f32.mrb[0].mxu1 }
 0x1b3   :  { %628 = vst.msk [vmem:[#allocation7 + $0x8] sm:$0xff] %vm118_vm4, %v9116_v47  ;;  %1174 = vst.msk [vmem:[#allocation7 + $0x18] sm:$0xff] %vm118_vm4, %v9158_v48  ;;  %v617_v53 = vpop.f32.mrb[1].mxu0  ;;  %v1162_v51 = vpop.f32.mrb[1].mxu1 }
 0x1b4   :  { %627 = vst.msk [vmem:[#allocation7] sm:$0xff] %vm118_vm4, %v617_v53  ;;  %1173 = vst.msk [vmem:[#allocation7 + $0x10] sm:$0xff] %vm118_vm4, %v1162_v51 }
 0x1de   :  { %v9200_v33 = vpop.f32.mrb[2].mxu0  ;;  %v9242_v36 = vpop.f32.mrb[2].mxu1 }
 0x1df   :  { %1720 = vst.msk [vmem:[#allocation7 + $0x28] sm:$0xff] %vm118_vm4, %v9200_v33  ;;  %2266 = vst.msk [vmem:[#allocation7 + $0x38] sm:$0xff] %vm118_vm4, %v9242_v36  ;;  %v1708_v52 = vpop.f32.mrb[3].mxu0  ;;  %v2254_v54 = vpop.f32.mrb[3].mxu1 }
 0x1e0   :  { %1719 = vst.msk [vmem:[#allocation7 + $0x20] sm:$0xff] %vm118_vm4, %v1708_v52  ;;  %2265 = vst.msk [vmem:[#allocation7 + $0x30] sm:$0xff] %vm118_vm4, %v2254_v54 }
 0x20a   :  { %v9284_v55 = vpop.f32.mrb[4].mxu0  ;;  %v9326_v56 = vpop.f32.mrb[4].mxu1 }
 0x20b   :  { %2812 = vst.msk [vmem:[#allocation7 + $0x48] sm:$0xff] %vm118_vm4, %v9284_v55  ;;  %3358 = vst.msk [vmem:[#allocation7 + $0x58] sm:$0xff] %vm118_vm4, %v9326_v56  ;;  %v2800_v57 = vpop.f32.mrb[5].mxu0  ;;  %v3346_v58 = vpop.f32.mrb[5].mxu1 }
 0x20c   :  { %2811 = vst.msk [vmem:[#allocation7 + $0x40] sm:$0xff] %vm118_vm4, %v2800_v57  ;;  %3357 = vst.msk [vmem:[#allocation7 + $0x50] sm:$0xff] %vm118_vm4, %v3346_v58 }
 0x236   :  { %v9368_v59 = vpop.f32.mrb[6].mxu0  ;;  %v9410_v60 = vpop.f32.mrb[6].mxu1 }
 0x237   :  { %3904 = vst.msk [vmem:[#allocation7 + $0x68] sm:$0xff] %vm118_vm4, %v9368_v59  ;;  %4450 = vst.msk [vmem:[#allocation7 + $0x78] sm:$0xff] %vm118_vm4, %v9410_v60  ;;  %v3892_v61 = vpop.f32.mrb[7].mxu0  ;;  %v4438_v62 = vpop.f32.mrb[7].mxu1 }
 0x238   :  { %3903 = vst.msk [vmem:[#allocation7 + $0x60] sm:$0xff] %vm118_vm4, %v3892_v61  ;;  %4449 = vst.msk [vmem:[#allocation7 + $0x70] sm:$0xff] %vm118_vm4, %v4438_v62 }
 0x239 PF:  { %p8642_p11 = scmp.ne.s32.totalorder %s11084_s0, 2 }
 0x23a   :  { %v4455_v63 = vld [vmem:[#allocation4] sm:$0xff] (!%p8642_p11)  ;;  %v4456_v0 = vld [vmem:[#allocation4 + $0x8] sm:$0xff] (!%p8642_p11)  ;;  %vm4457_vm5 = vcmask (!%p8642_p11), 130048   ;;  %v4975_v1 = vld [vmem:[#allocation4 + $0x10] sm:$0xff] (!%p8642_p11) }
 0x23b   :  { %4454 = sbr.rel (%p8642_p11) target bundleno = 983 (0x3d7), region = 25  ;;  %v4465_v2 = vsel (!%p8642_p11), %vm4457_vm5, %v4455_v63, 0  ;;  %v4468_v3 = vsel (!%p8642_p11), %vm4457_vm5, %v4456_v0, 0  ;;  %v4976_v4 = vld [vmem:[#allocation4 + $0x18] sm:$0xff] (!%p8642_p11)  ;;  %v4978_v5 = vsel (!%p8642_p11), %vm4457_vm5, %v4975_v1, 0  ;;  %v4459_v6 = vsel (!%p8642_p11), %vm4457_vm5, %v10405_v23, 0 }
 0x23c   :  { %v4471_v7 = vand.u32 (!%p8642_p11), 4294901760, %v4465_v2  ;;  %v4474_v8 = vand.u32 (!%p8642_p11), 4294901760, %v4468_v3  ;;  %v4981_v9 = vsel (!%p8642_p11), %vm4457_vm5, %v4976_v4, 0  ;;  %v4984_v10 = vand.u32 (!%p8642_p11), 4294901760, %v4978_v5  ;;  %v5489_v49 = vld [vmem:[#allocation4 + $0x20] sm:$0xff] (!%p8642_p11)  ;;  %v5490_v50 = vld [vmem:[#allocation4 + $0x28] sm:$0xff] (!%p8642_p11) }
 0x23d   :  { %v4987_v11 = vand.u32 (!%p8642_p11), 4294901760, %v4981_v9  ;;  %v10768_v12 = vsub.f32 (!%p8642_p11), %v4459_v6, %v4459_v6  ;;  %v4462_v13 = vsel (!%p8642_p11), %vm4457_vm5, %v10408_v24, 0  ;;  %v6003_v47 = vld [vmem:[#allocation4 + $0x30] sm:$0xff] (!%p8642_p11)  ;;  %v6004_v48 = vld [vmem:[#allocation4 + $0x38] sm:$0xff] (!%p8642_p11)  ;;  %v5492_v33 = vsel (!%p8642_p11), %vm4457_vm5, %v5489_v49, 0 }
 0x23e   :  { %v10772_v14 = vpack.c.bf16 (!%p8642_p11), %v4474_v8, %v4471_v7  ;;  %v10774_v15 = vsub.f32 (!%p8642_p11), %v4462_v13, %v4462_v13  ;;  %v4559_v16 = vsub.f32 (!%p8642_p11), %v4465_v2, %v4471_v7  ;;  %v4566_v17 = vsub.f32 (!%p8642_p11), %v4468_v3, %v4474_v8 }
 0x23f   :  { %v10776_v18 = vpack.c.bf16 (!%p8642_p11), %v4987_v11, %v4984_v10  ;;  %v10779_v19 = vand.u32 (!%p8642_p11), 4294901760, %v10768_v12  ;;  %v5072_v20 = vsub.f32 (!%p8642_p11), %v4978_v5, %v4984_v10  ;;  %v5079_v21 = vsub.f32 (!%p8642_p11), %v4981_v9, %v4987_v11 }
 0x240   :  { %9940 = vmatprep.subr.bf16.mxu0 (!%p8642_p11), %v10772_v14  ;;  %v10783_v22 = vand.u32 (!%p8642_p11), 4294901760, %v10774_v15  ;;  %v4560_v25 = vand.u32 (!%p8642_p11), 4294901760, %v4559_v16  ;;  %v4567_v26 = vand.u32 (!%p8642_p11), 4294901760, %v4566_v17  ;;  %v9947_v45 = vpack.c.bf16 (!%p8642_p11), %v4566_v17, %v4559_v16 }
 0x241   :  { %9964 = vmatprep.subr.bf16.mxu1 (!%p8642_p11), %v10776_v18  ;;  %9942 = vmatpush3.bf16.xpose.msra.mxu0 (!%p8642_p11), %v10772_v14  ;;  %v4540_v27 = vsub.f32 (!%p8642_p11), %v10768_v12, %v10779_v19  ;;  %v5073_v28 = vand.u32 (!%p8642_p11), 4294901760, %v5072_v20  ;;  %v5080_v29 = vand.u32 (!%p8642_p11), 4294901760, %v5079_v21  ;;  %v9971_v46 = vpack.c.bf16 (!%p8642_p11), %v5079_v21, %v5072_v20 }
 0x242   :  { %9966 = vmatpush3.bf16.xpose.msra.mxu1 %v10776_v18  ;;  %v4550_v30 = vsub.f32 %v10774_v15, %v10783_v22  ;;  %v4561_v31 = vsub.f32 %v4559_v16, %v4560_v25  ;;  %v4568_v32 = vsub.f32 %v4566_v17, %v4567_v26  ;;  %v9955_v53 = vpack.c.bf16 %v4567_v26, %v4560_v25  ;;  %v7031_v25 = vld [vmem:[#allocation4 + $0x50] sm:$0xff]  ;;  %v7032_v26 = vld [vmem:[#allocation4 + $0x58] sm:$0xff] }
 0x243   :  { %v10792_v34 = vand.u32 4294901760, %v4540_v27  ;;  %v5074_v35 = vsub.f32 %v5072_v20, %v5073_v28  ;;  %v5081_v37 = vsub.f32 %v5079_v21, %v5080_v29  ;;  %v9979_v51 = vpack.c.bf16 %v5080_v29, %v5073_v28  ;;  %v6517_v20 = vld [vmem:[#allocation4 + $0x40] sm:$0xff]  ;;  %v6518_v21 = vld [vmem:[#allocation4 + $0x48] sm:$0xff] }
 0x244   :  { %v10794_v38 = vand.u32 4294901760, %v4550_v30  ;;  %v4562_v39 = vand.u32 4294901760, %v4561_v31  ;;  %v4569_v40 = vand.u32 4294901760, %v4568_v32  ;;  %v5495_v36 = vsel %vm4457_vm5, %v5490_v50, 0 }
 0x245   :  { %9415 = vmatprep.mubr.f32.mxu0 %v10792_v34  ;;  %9457 = vmatprep.mubr.f32.mxu1 %v10792_v34  ;;  %v5075_v41 = vand.u32 4294901760, %v5074_v35  ;;  %v5082_v42 = vand.u32 4294901760, %v5081_v37  ;;  %v6006_v52 = vsel %vm4457_vm5, %v6003_v47, 0  ;;  %v6009_v54 = vsel %vm4457_vm5, %v6004_v48, 0 }
 0x246   :  { %v9943_v43 = vpack.c.bf16 %v4569_v40, %v4562_v39  ;;  %v5498_v55 = vand.u32 4294901760, %v5492_v33  ;;  %v5501_v56 = vand.u32 4294901760, %v5495_v36  ;;  %v6012_v57 = vand.u32 4294901760, %v6006_v52 }
 0x247   :  { %v9967_v44 = vpack.c.bf16 %v5082_v42, %v5075_v41  ;;  %v6015_v58 = vand.u32 4294901760, %v6009_v54  ;;  %v6520_v29 = vsel %vm4457_vm5, %v6517_v20, 0  ;;  %v6523_v30 = vsel %vm4457_vm5, %v6518_v21, 0 }
 0x248   :  { %9416 = vmatmul.mubr.f32.vlgmr.msra.gmra.mrb[0].mxu0 %v10794_v38  ;;  %9944 = vmatprep.subr.bf16.mxu0 %v9943_v43  ;;  %v10822_v59 = vsub.f32 %v5492_v33, %v5498_v55  ;;  %v10824_v60 = vsub.f32 %v5495_v36, %v5501_v56  ;;  %v10826_v61 = vsub.f32 %v6006_v52, %v6012_v57  ;;  %v7034_v31 = vsel %vm4457_vm5, %v7031_v25, 0 }
 0x249   :  { %9458 = vmatmul.mubr.f32.vlgmr.msra.gmra.mrb[0].mxu1 %v10794_v38  ;;  %9968 = vmatprep.subr.bf16.mxu1 %v9967_v44  ;;  %v10828_v62 = vsub.f32 %v6009_v54, %v6015_v58  ;;  %v10842_v3 = vpack.c.bf16 %v5501_v56, %v5498_v55  ;;  %v10844_v4 = vpack.c.bf16 %v6015_v58, %v6012_v57  ;;  %v7037_v32 = vsel %vm4457_vm5, %v7032_v26, 0 }
 0x24a   :  { %9946 = vmatpush3.bf16.xpose.msra.mxu0 %v9943_v43  ;;  %9970 = vmatpush3.bf16.xpose.msra.mxu1 %v9967_v44  ;;  %v5587_v63 = vand.u32 4294901760, %v10822_v59  ;;  %v5594_v0 = vand.u32 4294901760, %v10824_v60  ;;  %v6101_v1 = vand.u32 4294901760, %v10826_v61  ;;  %v6526_v35 = vand.u32 4294901760, %v6520_v29 }
 0x24b   :  { %9422 = vmatprep.mubr.msk.f32.mxu0 %vm4457_vm5, %v10405_v23  ;;  %9464 = vmatprep.mubr.msk.f32.mxu1 %vm4457_vm5, %v10405_v23  ;;  %v6108_v2 = vand.u32 4294901760, %v10828_v62  ;;  %v6529_v37 = vand.u32 4294901760, %v6523_v30  ;;  %v7040_v39 = vand.u32 4294901760, %v7034_v31  ;;  %v7043_v40 = vand.u32 4294901760, %v7037_v32 }
 0x24c   :  { %9948 = vmatprep.subr.bf16.mxu0 %v9947_v45  ;;  %9972 = vmatprep.subr.bf16.mxu1 %v9971_v46  ;;  %v5588_v5 = vsub.f32 %v10822_v59, %v5587_v63  ;;  %v5595_v6 = vsub.f32 %v10824_v60, %v5594_v0  ;;  %v6102_v7 = vsub.f32 %v10826_v61, %v6101_v1 }
 0x24d   :  { %v6109_v8 = vsub.f32 %v10828_v62, %v6108_v2  ;;  %v10003_v27 = vpack.c.bf16 %v5594_v0, %v5587_v63  ;;  %v10027_v28 = vpack.c.bf16 %v6108_v2, %v6101_v1  ;;  %v10898_v41 = vsub.f32 %v6520_v29, %v6526_v35  ;;  %v8059_v63 = vld [vmem:[#allocation4 + $0x70] sm:$0xff]  ;;  %v8060_v0 = vld [vmem:[#allocation4 + $0x78] sm:$0xff] }
 0x24e   :  { %v5589_v9 = vand.u32 4294901760, %v5588_v5  ;;  %v5596_v10 = vand.u32 4294901760, %v5595_v6  ;;  %v6103_v11 = vand.u32 4294901760, %v6102_v7  ;;  %v10900_v42 = vsub.f32 %v6523_v30, %v6529_v37 }
 0x24f   :  { %v6110_v13 = vand.u32 4294901760, %v6109_v8  ;;  %v10902_v43 = vsub.f32 %v7034_v31, %v7040_v39  ;;  %v10904_v44 = vsub.f32 %v7037_v32, %v7043_v40  ;;  %v10918_v47 = vpack.c.bf16 %v6529_v37, %v6526_v35 }
 0x250   :  { %v9991_v16 = vpack.c.bf16 %v5596_v10, %v5589_v9  ;;  %v10920_v48 = vpack.c.bf16 %v7043_v40, %v7040_v39  ;;  %v8062_v5 = vsel %vm4457_vm5, %v8059_v63, 0  ;;  %v8065_v6 = vsel %vm4457_vm5, %v8060_v0, 0 }
 0x251   :  { %9423 = vmatmul.mubr.msk.f32.vlgmr.msra.gmra.mrb[0].mxu0 %vm4457_vm5, %v10408_v24  ;;  %9465 = vmatmul.mubr.msk.f32.vlgmr.msra.gmra.mrb[0].mxu1 %vm4457_vm5, %v10408_v24  ;;  %v10015_v17 = vpack.c.bf16 %v6110_v13, %v6103_v11  ;;  %v7129_v49 = vand.u32 4294901760, %v10902_v43  ;;  %v7136_v50 = vand.u32 4294901760, %v10904_v44  ;;  %v8068_v9 = vand.u32 4294901760, %v8062_v5 }
 0x252   :  { %9950 = vmatpush3.bf16.xpose.msra.mxu0 %v9947_v45  ;;  %9974 = vmatpush3.bf16.xpose.msra.mxu1 %v9971_v46  ;;  %v6615_v45 = vand.u32 4294901760, %v10898_v41  ;;  %v6622_v46 = vand.u32 4294901760, %v10900_v42  ;;  %v8071_v10 = vand.u32 4294901760, %v8065_v6 }
 0x253   :  { %9429 = vmatprep.mubr.f32.mxu0 %v10768_v12  ;;  %9471 = vmatprep.mubr.f32.mxu1 %v10768_v12  ;;  %v7130_v33 = vsub.f32 %v10902_v43, %v7129_v49  ;;  %v7137_v36 = vsub.f32 %v10904_v44, %v7136_v50  ;;  %v10075_v2 = vpack.c.bf16 %v7136_v50, %v7129_v49 }
 0x254   :  { %9952 = vmatprep.subr.bf16.mxu0 %v10772_v14  ;;  %9976 = vmatprep.subr.bf16.mxu1 %v10776_v18  ;;  %v10051_v1 = vpack.c.bf16 %v6622_v46, %v6615_v45  ;;  %v10987_v26 = vpack.c.bf16 %v8071_v10, %v8068_v9 }
 0x255   :  { %v7131_v55 = vand.u32 4294901760, %v7130_v33  ;;  %v7138_v56 = vand.u32 4294901760, %v7137_v36 }
 0x257   :  { %v10063_v58 = vpack.c.bf16 %v7138_v56, %v7131_v55 }
 0x259   :  { %9430 = vmatmul.mubr.f32.vlgmr.msra.gmra.mrb[0].mxu0 %v10774_v15  ;;  %9472 = vmatmul.mubr.f32.vlgmr.msra.gmra.mrb[0].mxu1 %v10774_v15 }
 0x25a   :  { %9954 = vmatpush3.bf16.xpose.msra.mxu0 %v10772_v14  ;;  %9978 = vmatpush3.bf16.xpose.msra.mxu1 %v10776_v18 }
 0x25b   :  { %9436 = vmatprep.mubr.f32.mxu0 %v10779_v19  ;;  %9478 = vmatprep.mubr.f32.mxu1 %v10779_v19 }
 0x25c   :  { %9956 = vmatprep.subr.bf16.mxu0 %v9955_v53  ;;  %9980 = vmatprep.subr.bf16.mxu1 %v9979_v51 }
 0x261   :  { %9437 = vmatmul.mubr.f32.vlgmr.msra.gmra.mrb[0].mxu0 %v10783_v22  ;;  %9479 = vmatmul.mubr.f32.vlgmr.msra.gmra.mrb[0].mxu1 %v10783_v22 }
 0x262   :  { %9958 = vmatpush3.bf16.xpose.msra.mxu0 %v9955_v53  ;;  %9982 = vmatpush3.bf16.xpose.msra.mxu1 %v9979_v51  ;;  %v6616_v53 = vsub.f32 %v10898_v41, %v6615_v45  ;;  %v6623_v51 = vsub.f32 %v10900_v42, %v6622_v46 }
 0x263   :  { %9443 = vmatprep.mubr.msk.f32.mxu0 %vm4457_vm5, %v10405_v23  ;;  %9485 = vmatprep.mubr.msk.f32.mxu1 %vm4457_vm5, %v10405_v23 }
 0x264   :  { %9960 = vmatprep.subr.bf16.mxu0 %v10772_v14  ;;  %9984 = vmatprep.subr.bf16.mxu1 %v10776_v18  ;;  %v6617_v52 = vand.u32 4294901760, %v6616_v53  ;;  %v6624_v54 = vand.u32 4294901760, %v6623_v51 }
 0x266   :  { %v10039_v57 = vpack.c.bf16 %v6624_v54, %v6617_v52 }
 0x269   :  { %9444 = vmatmul.mubr.msk.f32.vlgmr.msra.gmra.mrb[0].mxu0 %vm4457_vm5, %v10408_v24  ;;  %9486 = vmatmul.mubr.msk.f32.vlgmr.msra.gmra.mrb[0].mxu1 %vm4457_vm5, %v10408_v24 }
 0x26a   :  { %9962 = vmatpush3.bf16.xpose.msra.mxu0 %v10772_v14  ;;  %9986 = vmatpush3.bf16.xpose.msra.mxu1 %v10776_v18  ;;  %v9995_v14 = vpack.c.bf16 %v10824_v60, %v10822_v59  ;;  %v10019_v18 = vpack.c.bf16 %v10828_v62, %v10826_v61  ;;  %v10043_v59 = vpack.c.bf16 %v10900_v42, %v10898_v41  ;;  %v7545_v61 = vld [vmem:[#allocation4 + $0x60] sm:$0xff]  ;;  %v7546_v62 = vld [vmem:[#allocation4 + $0x68] sm:$0xff] }
 0x26b   :  { %9450 = vmatprep.mubr.msk.f32.mxu0 %vm4457_vm5, %v10405_v23  ;;  %9492 = vmatprep.mubr.msk.f32.mxu1 %vm4457_vm5, %v10405_v23  ;;  %v10067_v60 = vpack.c.bf16 %v10904_v44, %v10902_v43 }
 0x26c   :  { %9988 = vmatprep.subr.bf16.mxu0 %v10842_v3  ;;  %10012 = vmatprep.subr.bf16.mxu1 %v10844_v4 }
 0x271   :  { %9451 = vmatmul.mubr.msk.f32.vlgmr.msra.gmra.mrb[0].mxu0 %vm4457_vm5, %v10408_v24  ;;  %9493 = vmatmul.mubr.msk.f32.vlgmr.msra.gmra.mrb[0].mxu1 %vm4457_vm5, %v10408_v24 }
 0x272   :  { %9990 = vmatpush3.bf16.xpose.msra.mxu0 %v10842_v3  ;;  %10014 = vmatpush3.bf16.xpose.msra.mxu1 %v10844_v4 }
 0x273   :  { %9499 = vmatprep.mubr.f32.mxu0 %v10792_v34  ;;  %9541 = vmatprep.mubr.f32.mxu1 %v10792_v34 }
 0x274   :  { %9992 = vmatprep.subr.bf16.mxu0 %v9991_v16  ;;  %10016 = vmatprep.subr.bf16.mxu1 %v10015_v17 }
 0x279   :  { %9500 = vmatmul.mubr.f32.vlgmr.msra.gmra.mrb[2].mxu0 %v10794_v38  ;;  %9542 = vmatmul.mubr.f32.vlgmr.msra.gmra.mrb[2].mxu1 %v10794_v38 }
 0x27a   :  { %9994 = vmatpush3.bf16.xpose.msra.mxu0 %v9991_v16  ;;  %10018 = vmatpush3.bf16.xpose.msra.mxu1 %v10015_v17  ;;  %v8156_v16 = vsub.f32 %v8062_v5, %v8068_v9  ;;  %v8163_v17 = vsub.f32 %v8065_v6, %v8071_v10 }
 0x27b   :  { %9506 = vmatprep.mubr.msk.f32.mxu0 %vm4457_vm5, %v10405_v23  ;;  %9548 = vmatprep.mubr.msk.f32.mxu1 %vm4457_vm5, %v10405_v23 }
 0x27c   :  { %9996 = vmatprep.subr.bf16.mxu0 %v9995_v14  ;;  %10020 = vmatprep.subr.bf16.mxu1 %v10019_v18  ;;  %v8157_v20 = vand.u32 4294901760, %v8156_v16  ;;  %v8164_v21 = vand.u32 4294901760, %v8163_v17  ;;  %v10115_v42 = vpack.c.bf16 %v8163_v17, %v8156_v16 }
 0x27e   :  { %v8158_v29 = vsub.f32 %v8156_v16, %v8157_v20  ;;  %v8165_v30 = vsub.f32 %v8163_v17, %v8164_v21 }
 0x280   :  { %v8159_v35 = vand.u32 4294901760, %v8158_v29  ;;  %v8166_v37 = vand.u32 4294901760, %v8165_v30 }
 0x281   :  { %9507 = vmatmul.mubr.msk.f32.vlgmr.msra.gmra.mrb[2].mxu0 %vm4457_vm5, %v10408_v24  ;;  %9549 = vmatmul.mubr.msk.f32.vlgmr.msra.gmra.mrb[2].mxu1 %vm4457_vm5, %v10408_v24 }
 0x282   :  { %9998 = vmatpush3.bf16.xpose.msra.mxu0 %v9995_v14  ;;  %10022 = vmatpush3.bf16.xpose.msra.mxu1 %v10019_v18  ;;  %v10111_v40 = vpack.c.bf16 %v8166_v37, %v8159_v35 }
 0x283   :  { %9513 = vmatprep.mubr.f32.mxu0 %v10768_v12  ;;  %9555 = vmatprep.mubr.f32.mxu1 %v10768_v12 }
 0x284   :  { %10000 = vmatprep.subr.bf16.mxu0 %v10842_v3  ;;  %10024 = vmatprep.subr.bf16.mxu1 %v10844_v4 }
 0x289   :  { %9514 = vmatmul.mubr.f32.vlgmr.msra.gmra.mrb[2].mxu0 %v10774_v15  ;;  %9556 = vmatmul.mubr.f32.vlgmr.msra.gmra.mrb[2].mxu1 %v10774_v15 }
 0x28a   :  { %10002 = vmatpush3.bf16.xpose.msra.mxu0 %v10842_v3  ;;  %10026 = vmatpush3.bf16.xpose.msra.mxu1 %v10844_v4 }
 0x28b   :  { %9520 = vmatprep.mubr.f32.mxu0 %v10779_v19  ;;  %9562 = vmatprep.mubr.f32.mxu1 %v10779_v19 }
 0x28c   :  { %10004 = vmatprep.subr.bf16.mxu0 %v10003_v27  ;;  %10028 = vmatprep.subr.bf16.mxu1 %v10027_v28 }
 0x291   :  { %9521 = vmatmul.mubr.f32.vlgmr.msra.gmra.mrb[2].mxu0 %v10783_v22  ;;  %9563 = vmatmul.mubr.f32.vlgmr.msra.gmra.mrb[2].mxu1 %v10783_v22 }
 0x292   :  { %10006 = vmatpush3.bf16.xpose.msra.mxu0 %v10003_v27  ;;  %10030 = vmatpush3.bf16.xpose.msra.mxu1 %v10027_v28 }
 0x293   :  { %9527 = vmatprep.mubr.msk.f32.mxu0 %vm4457_vm5, %v10405_v23  ;;  %9569 = vmatprep.mubr.msk.f32.mxu1 %vm4457_vm5, %v10405_v23 }
 0x294   :  { %10008 = vmatprep.subr.bf16.mxu0 %v10842_v3  ;;  %10032 = vmatprep.subr.bf16.mxu1 %v10844_v4 }
 0x299   :  { %9528 = vmatmul.mubr.msk.f32.vlgmr.msra.gmra.mrb[2].mxu0 %vm4457_vm5, %v10408_v24  ;;  %9570 = vmatmul.mubr.msk.f32.vlgmr.msra.gmra.mrb[2].mxu1 %vm4457_vm5, %v10408_v24 }
 0x29a   :  { %10010 = vmatpush3.bf16.xpose.msra.mxu0 %v10842_v3  ;;  %10034 = vmatpush3.bf16.xpose.msra.mxu1 %v10844_v4  ;;  %v7548_v3 = vsel %vm4457_vm5, %v7545_v61, 0  ;;  %v7551_v4 = vsel %vm4457_vm5, %v7546_v62, 0 }
 0x29b   :  { %9534 = vmatprep.mubr.msk.f32.mxu0 %vm4457_vm5, %v10405_v23  ;;  %9576 = vmatprep.mubr.msk.f32.mxu1 %vm4457_vm5, %v10405_v23  ;;  %v7554_v7 = vand.u32 4294901760, %v7548_v3  ;;  %v7557_v8 = vand.u32 4294901760, %v7551_v4 }
 0x29c   :  { %10036 = vmatprep.subr.bf16.mxu0 %v10918_v47  ;;  %10060 = vmatprep.subr.bf16.mxu1 %v10920_v48 }
 0x29d   :  { %v10974_v11 = vsub.f32 %v7548_v3, %v7554_v7  ;;  %v7649_v13 = vsub.f32 %v7551_v4, %v7557_v8  ;;  %v10985_v25 = vpack.c.bf16 %v7557_v8, %v7554_v7 }
 0x29f   :  { %v7643_v14 = vand.u32 4294901760, %v10974_v11  ;;  %v7650_v18 = vand.u32 4294901760, %v7649_v13  ;;  %v10091_v41 = vpack.c.bf16 %v7649_v13, %v10974_v11 }
 0x2a1   :  { %9535 = vmatmul.mubr.msk.f32.vlgmr.msra.gmra.mrb[2].mxu0 %vm4457_vm5, %v10408_v24  ;;  %9577 = vmatmul.mubr.msk.f32.vlgmr.msra.gmra.mrb[2].mxu1 %vm4457_vm5, %v10408_v24  ;;  %v7644_v27 = vsub.f32 %v10974_v11, %v7643_v14  ;;  %v7651_v28 = vsub.f32 %v7649_v13, %v7650_v18 }
 0x2a2   :  { %10038 = vmatpush3.bf16.xpose.msra.mxu0 %v10918_v47  ;;  %10062 = vmatpush3.bf16.xpose.msra.mxu1 %v10920_v48 }
 0x2a3   :  { %9583 = vmatprep.mubr.f32.mxu0 %v10792_v34  ;;  %9625 = vmatprep.mubr.f32.mxu1 %v10792_v34  ;;  %v7645_v31 = vand.u32 4294901760, %v7644_v27  ;;  %v7652_v32 = vand.u32 4294901760, %v7651_v28 }
 0x2a4   :  { %10040 = vmatprep.subr.bf16.mxu0 %v10039_v57  ;;  %10064 = vmatprep.subr.bf16.mxu1 %v10063_v58 }
 0x2a5   :  { %v10087_v39 = vpack.c.bf16 %v7652_v32, %v7645_v31 }
 0x2a9   :  { %9584 = vmatmul.mubr.f32.vlgmr.msra.gmra.mrb[4].mxu0 %v10794_v38  ;;  %9626 = vmatmul.mubr.f32.vlgmr.msra.gmra.mrb[4].mxu1 %v10794_v38 }
 0x2aa   :  { %10042 = vmatpush3.bf16.xpose.msra.mxu0 %v10039_v57  ;;  %10066 = vmatpush3.bf16.xpose.msra.mxu1 %v10063_v58 }
 0x2ab   :  { %9590 = vmatprep.mubr.msk.f32.mxu0 %vm4457_vm5, %v10405_v23  ;;  %9632 = vmatprep.mubr.msk.f32.mxu1 %vm4457_vm5, %v10405_v23 }
 0x2ac   :  { %10044 = vmatprep.subr.bf16.mxu0 %v10043_v59  ;;  %10068 = vmatprep.subr.bf16.mxu1 %v10067_v60 }
 0x2b1   :  { %9591 = vmatmul.mubr.msk.f32.vlgmr.msra.gmra.mrb[4].mxu0 %vm4457_vm5, %v10408_v24  ;;  %9633 = vmatmul.mubr.msk.f32.vlgmr.msra.gmra.mrb[4].mxu1 %vm4457_vm5, %v10408_v24 }
 0x2b2   :  { %10046 = vmatpush3.bf16.xpose.msra.mxu0 %v10043_v59  ;;  %10070 = vmatpush3.bf16.xpose.msra.mxu1 %v10067_v60 }
 0x2b3   :  { %9597 = vmatprep.mubr.f32.mxu0 %v10768_v12  ;;  %9639 = vmatprep.mubr.f32.mxu1 %v10768_v12 }
 0x2b4   :  { %10048 = vmatprep.subr.bf16.mxu0 %v10918_v47  ;;  %10072 = vmatprep.subr.bf16.mxu1 %v10920_v48 }
 0x2b9   :  { %9598 = vmatmul.mubr.f32.vlgmr.msra.gmra.mrb[4].mxu0 %v10774_v15  ;;  %9640 = vmatmul.mubr.f32.vlgmr.msra.gmra.mrb[4].mxu1 %v10774_v15 }
 0x2ba   :  { %10050 = vmatpush3.bf16.xpose.msra.mxu0 %v10918_v47  ;;  %10074 = vmatpush3.bf16.xpose.msra.mxu1 %v10920_v48 }
 0x2bb   :  { %9604 = vmatprep.mubr.f32.mxu0 %v10779_v19  ;;  %9646 = vmatprep.mubr.f32.mxu1 %v10779_v19 }
 0x2bc   :  { %10052 = vmatprep.subr.bf16.mxu0 %v10051_v1  ;;  %10076 = vmatprep.subr.bf16.mxu1 %v10075_v2 }
 0x2c1   :  { %9605 = vmatmul.mubr.f32.vlgmr.msra.gmra.mrb[4].mxu0 %v10783_v22  ;;  %9647 = vmatmul.mubr.f32.vlgmr.msra.gmra.mrb[4].mxu1 %v10783_v22 }
 0x2c2   :  { %10054 = vmatpush3.bf16.xpose.msra.mxu0 %v10051_v1  ;;  %10078 = vmatpush3.bf16.xpose.msra.mxu1 %v10075_v2 }
 0x2c3   :  { %9611 = vmatprep.mubr.msk.f32.mxu0 %vm4457_vm5, %v10405_v23  ;;  %9653 = vmatprep.mubr.msk.f32.mxu1 %vm4457_vm5, %v10405_v23 }
 0x2c4   :  { %10056 = vmatprep.subr.bf16.mxu0 %v10918_v47  ;;  %10080 = vmatprep.subr.bf16.mxu1 %v10920_v48 }
 0x2c9   :  { %9612 = vmatmul.mubr.msk.f32.vlgmr.msra.gmra.mrb[4].mxu0 %vm4457_vm5, %v10408_v24  ;;  %9654 = vmatmul.mubr.msk.f32.vlgmr.msra.gmra.mrb[4].mxu1 %vm4457_vm5, %v10408_v24 }
 0x2ca   :  { %10058 = vmatpush3.bf16.xpose.msra.mxu0 %v10918_v47  ;;  %10082 = vmatpush3.bf16.xpose.msra.mxu1 %v10920_v48 }
 0x2cb   :  { %9618 = vmatprep.mubr.msk.f32.mxu0 %vm4457_vm5, %v10405_v23  ;;  %9660 = vmatprep.mubr.msk.f32.mxu1 %vm4457_vm5, %v10405_v23 }
 0x2cc   :  { %10084 = vmatprep.subr.bf16.mxu0 %v10985_v25  ;;  %10108 = vmatprep.subr.bf16.mxu1 %v10987_v26 }
 0x2d1   :  { %9619 = vmatmul.mubr.msk.f32.vlgmr.msra.gmra.mrb[4].mxu0 %vm4457_vm5, %v10408_v24  ;;  %9661 = vmatmul.mubr.msk.f32.vlgmr.msra.gmra.mrb[4].mxu1 %vm4457_vm5, %v10408_v24 }
 0x2d2   :  { %10086 = vmatpush3.bf16.xpose.msra.mxu0 %v10985_v25  ;;  %10110 = vmatpush3.bf16.xpose.msra.mxu1 %v10987_v26 }
 0x2d3   :  { %9667 = vmatprep.mubr.f32.mxu0 %v10792_v34  ;;  %9709 = vmatprep.mubr.f32.mxu1 %v10792_v34  ;;  %v10099_v34 = vpack.c.bf16 %v7650_v18, %v7643_v14 }
 0x2d4   :  { %10088 = vmatprep.subr.bf16.mxu0 %v10087_v39  ;;  %10112 = vmatprep.subr.bf16.mxu1 %v10111_v40 }
 0x2d9   :  { %9668 = vmatmul.mubr.f32.vlgmr.msra.gmra.mrb[6].mxu0 %v10794_v38  ;;  %9710 = vmatmul.mubr.f32.vlgmr.msra.gmra.mrb[6].mxu1 %v10794_v38  ;;  %v10123_v38 = vpack.c.bf16 %v8164_v21, %v8157_v20 }
 0x2da   :  { %10090 = vmatpush3.bf16.xpose.msra.mxu0 %v10087_v39  ;;  %10114 = vmatpush3.bf16.xpose.msra.mxu1 %v10111_v40 }
 0x2db   :  { %9674 = vmatprep.mubr.msk.f32.mxu0 %vm4457_vm5, %v10405_v23  ;;  %9716 = vmatprep.mubr.msk.f32.mxu1 %vm4457_vm5, %v10405_v23 }
 0x2dc   :  { %10092 = vmatprep.subr.bf16.mxu0 %v10091_v41  ;;  %10116 = vmatprep.subr.bf16.mxu1 %v10115_v42 }
 0x2e1   :  { %9675 = vmatmul.mubr.msk.f32.vlgmr.msra.gmra.mrb[6].mxu0 %vm4457_vm5, %v10408_v24  ;;  %9717 = vmatmul.mubr.msk.f32.vlgmr.msra.gmra.mrb[6].mxu1 %vm4457_vm5, %v10408_v24 }
 0x2e2   :  { %10094 = vmatpush3.bf16.xpose.msra.mxu0 %v10091_v41  ;;  %10118 = vmatpush3.bf16.xpose.msra.mxu1 %v10115_v42 }
 0x2e3   :  { %9681 = vmatprep.mubr.f32.mxu0 %v10768_v12  ;;  %9723 = vmatprep.mubr.f32.mxu1 %v10768_v12 }
 0x2e4   :  { %10096 = vmatprep.subr.bf16.mxu0 %v10985_v25  ;;  %10120 = vmatprep.subr.bf16.mxu1 %v10987_v26 }
 0x2e9   :  { %9682 = vmatmul.mubr.f32.vlgmr.msra.gmra.mrb[6].mxu0 %v10774_v15  ;;  %9724 = vmatmul.mubr.f32.vlgmr.msra.gmra.mrb[6].mxu1 %v10774_v15 }
 0x2ea   :  { %10098 = vmatpush3.bf16.xpose.msra.mxu0 %v10985_v25  ;;  %10122 = vmatpush3.bf16.xpose.msra.mxu1 %v10987_v26 }
 0x2eb   :  { %9688 = vmatprep.mubr.f32.mxu0 %v10779_v19  ;;  %9730 = vmatprep.mubr.f32.mxu1 %v10779_v19 }
 0x2ec   :  { %10100 = vmatprep.subr.bf16.mxu0 %v10099_v34  ;;  %10124 = vmatprep.subr.bf16.mxu1 %v10123_v38 }
 0x2f1   :  { %9689 = vmatmul.mubr.f32.vlgmr.msra.gmra.mrb[6].mxu0 %v10783_v22  ;;  %9731 = vmatmul.mubr.f32.vlgmr.msra.gmra.mrb[6].mxu1 %v10783_v22 }
 0x2f2   :  { %10102 = vmatpush3.bf16.xpose.msra.mxu0 %v10099_v34  ;;  %10126 = vmatpush3.bf16.xpose.msra.mxu1 %v10123_v38 }
 0x2f3   :  { %9695 = vmatprep.mubr.msk.f32.mxu0 %vm4457_vm5, %v10405_v23  ;;  %9737 = vmatprep.mubr.msk.f32.mxu1 %vm4457_vm5, %v10405_v23 }
 0x2f4   :  { %10104 = vmatprep.subr.bf16.mxu0 %v10985_v25  ;;  %10128 = vmatprep.subr.bf16.mxu1 %v10987_v26 }
 0x2f9   :  { %9696 = vmatmul.mubr.msk.f32.vlgmr.msra.gmra.mrb[6].mxu0 %vm4457_vm5, %v10408_v24  ;;  %9738 = vmatmul.mubr.msk.f32.vlgmr.msra.gmra.mrb[6].mxu1 %vm4457_vm5, %v10408_v24 }
 0x2fa   :  { %10106 = vmatpush3.bf16.xpose.msra.mxu0 %v10985_v25  ;;  %10130 = vmatpush3.bf16.xpose.msra.mxu1 %v10987_v26 }
 0x2fb   :  { %9702 = vmatprep.mubr.msk.f32.mxu0 %vm4457_vm5, %v10405_v23  ;;  %9744 = vmatprep.mubr.msk.f32.mxu1 %vm4457_vm5, %v10405_v23 }
 0x301   :  { %9703 = vmatmul.mubr.msk.f32.vlgmr.msra.gmra.mrb[6].mxu0 %vm4457_vm5, %v10408_v24  ;;  %9745 = vmatmul.mubr.msk.f32.vlgmr.msra.gmra.mrb[6].mxu1 %vm4457_vm5, %v10408_v24 }
 0x344   :  { %v9452_v12 = vpop.f32.mrb[0].mxu0  ;;  %v9494_v15 = vpop.f32.mrb[0].mxu1 }
 0x345   :  { %4973 = vst.msk [vmem:[#allocation7 + $0x8] sm:$0xff] %vm4457_vm5, %v9452_v12  ;;  %5487 = vst.msk [vmem:[#allocation7 + $0x18] sm:$0xff] %vm4457_vm5, %v9494_v15  ;;  %v4962_v19 = vpop.f32.mrb[1].mxu0  ;;  %v5475_v22 = vpop.f32.mrb[1].mxu1 }
 0x346   :  { %4972 = vst.msk [vmem:[#allocation7] sm:$0xff] %vm4457_vm5, %v4962_v19  ;;  %5486 = vst.msk [vmem:[#allocation7 + $0x10] sm:$0xff] %vm4457_vm5, %v5475_v22 }
 0x374   :  { %v9536_v43 = vpop.f32.mrb[2].mxu0  ;;  %v9578_v23 = vpop.f32.mrb[2].mxu1 }
 0x375   :  { %6001 = vst.msk [vmem:[#allocation7 + $0x28] sm:$0xff] %vm4457_vm5, %v9536_v43  ;;  %6515 = vst.msk [vmem:[#allocation7 + $0x38] sm:$0xff] %vm4457_vm5, %v9578_v23  ;;  %v5989_v44 = vpop.f32.mrb[3].mxu0  ;;  %v6503_v24 = vpop.f32.mrb[3].mxu1 }
 0x376   :  { %6000 = vst.msk [vmem:[#allocation7 + $0x20] sm:$0xff] %vm4457_vm5, %v5989_v44  ;;  %6514 = vst.msk [vmem:[#allocation7 + $0x30] sm:$0xff] %vm4457_vm5, %v6503_v24 }
 0x3a4   :  { %v9620_v45 = vpop.f32.mrb[4].mxu0  ;;  %v9662_v46 = vpop.f32.mrb[4].mxu1 }
 0x3a5   :  { %7029 = vst.msk [vmem:[#allocation7 + $0x48] sm:$0xff] %vm4457_vm5, %v9620_v45  ;;  %7543 = vst.msk [vmem:[#allocation7 + $0x58] sm:$0xff] %vm4457_vm5, %v9662_v46  ;;  %v7017_v49 = vpop.f32.mrb[5].mxu0  ;;  %v7531_v50 = vpop.f32.mrb[5].mxu1 }
 0x3a6   :  { %7028 = vst.msk [vmem:[#allocation7 + $0x40] sm:$0xff] %vm4457_vm5, %v7017_v49  ;;  %7542 = vst.msk [vmem:[#allocation7 + $0x50] sm:$0xff] %vm4457_vm5, %v7531_v50 }
 0x3d4   :  { %v9704_v47 = vpop.f32.mrb[6].mxu0  ;;  %v9746_v48 = vpop.f32.mrb[6].mxu1 }
 0x3d5   :  { %8057 = vst.msk [vmem:[#allocation7 + $0x68] sm:$0xff] %vm4457_vm5, %v9704_v47  ;;  %8571 = vst.msk [vmem:[#allocation7 + $0x78] sm:$0xff] %vm4457_vm5, %v9746_v48  ;;  %v8045_v53 = vpop.f32.mrb[7].mxu0  ;;  %v8559_v51 = vpop.f32.mrb[7].mxu1 }
 0x3d6   :  { %8056 = vst.msk [vmem:[#allocation7 + $0x60] sm:$0xff] %vm4457_vm5, %v8045_v53  ;;  %8570 = vst.msk [vmem:[#allocation7 + $0x70] sm:$0xff] %vm4457_vm5, %v8559_v51 }
 0x3d7 PF:  { %s10351_s0 = smov [#allocation7]  }
 0x3d8   :  { %s8577_s30 = sshll.u32 %s10351_s0, 4  ;;  %s8578_s30 = int_to_ptr.vmem [resolvable:$true] %s8577_s30 }
 0x3d9   :  { %s10320_s3 = scalar_lea.vmem %s8578_s30, 2048  ;;  %p10325_p13 = scmp.lt.s32.totalorder %s8578_s30, %s8578_s30 }
 0x3da   :  { %p10321_p12 = scmp.ne.s32.totalorder %s8578_s30, %s10320_s3  ;;  %p10326_p0 = scmp.lt.s32.totalorder %s10320_s3, %s10320_s3 }
 0x3dc   :  { %p10327_p1 = por %p10326_p0, %p10325_p13 }
 0x3de   :  { %p10328_p2 = pnand %p10327_p1, %p10321_p12 }
 0x3e0   :  { %10331 = shalt.err (!%p10328_p2)
}
 0x3e1   :  { %s10332_s6 = scalar_lea.hbm %s11086_s2, 2048 }
 0x3e2   :  { %p10333_p3 = scmp.ne.s32.totalorder %s11086_s2, %s10332_s6  ;;  %p10336_p4 = scmp.lt.u32.totalorder %s10332_s6, %s11086_s2 }
 0x3e4   :  { %p10338_p5 = pnand %p10336_p4, %p10333_p3 }
 0x3e6   :  { %10341 = shalt.err (!%p10338_p5)
}
 0x3e7   :  { %8583 = dma.vmem_to_hbm [thread:$0]  %s8578_s30, 2048, %s11086_s2, [#allocation6], %s10347_s19, %s10347_s19, %s10348_s20  }
 0x3e8   :  { %10344 = dma.done.wait [#allocation6], 2048  }
 0x3e9   :  { %10345 = vsyncadd [#allocation6], 4294965248 }
 0x3ea   :  { %8587 = vsyncpa [#allocation5], 1 }
 0x3eb   :  { %8588 = vsyncpa [#allocation6], 1 }

</bundles_post_ra>
